<compile_context>
chip_gen: v7x
topology: tpu7x:2x2x1
jax: 0.10.0
libtpu: 0.0.40
codegen_flags: <defaults>
</compile_context>

<pallas_src>
import jax
import jax.numpy as jnp
from jax import lax
from jax.experimental import pallas as pl
from jax.experimental.pallas import tpu as pltpu

_BN_EPS = 1e-5


# --------------------------------------------------------------------------
# Pallas kernel: one FNO block per grid step (grid = (4,), "arbitrary").
# --------------------------------------------------------------------------
def _net1d_block_kernel(x_ref, fc0bd_ref, fc0b_ref, f2_ref, grt_ref, git_ref,
                        wrbd_ref, wibd_ref, cwbd_ref, cb_ref, g_ref, bt_ref,
                        fc1bd_ref, fc1b_ref, fc2bd_ref, fc2b_ref,
                        out_ref, a_scr):
    blk = pl.program_id(0)
    nblk = pl.num_programs(0)

    N, BW = a_scr.shape                       # activation: (spatial, batch*width)
    two_m = f2_ref.shape[0]
    M = two_m // 2
    B = out_ref.shape[1]
    W = BW // B
    inv_cnt = 1.0 / float(N * B)

    def _tile_b(v):                           # (1, W) -> (1, B*W)
        return jnp.concatenate([v] * B, axis=1) if B > 1 else v

    def _fold_b(v):                           # (1, B*W) -> (1, W)  (sum over batch groups)
        acc = v[:, 0:W]
        for b in range(1, B):
            acc = acc + v[:, b * W:(b + 1) * W]
        return acc

    # ---- fc0: Linear(2, W) (block-diag over batch), only on the first block
    @pl.when(blk == 0)
    def _():
        a_scr[...] = (jnp.dot(x_ref[...], fc0bd_ref[...],
                              preferred_element_type=jnp.float32)
                      + fc0b_ref[...])

    a = a_scr[...]                            # (N, B*W) f32, n-major
    a_bf = a.astype(jnp.bfloat16)

    # ---- SpectralConv1d: 2-D truncated DFT -> per-mode complex mix -> inverse
    # forward truncated ortho rfft: F2 = [frt; fit], pushed to the MXU once
    xf = jnp.dot(f2_ref[...], a_bf, preferred_element_type=jnp.float32)  # (2M, B*W)
    xf3 = lax.broadcast_in_dim(xf, (two_m, 1, BW), (0, 2))               # add unit free dim
    re3 = xf3[:M].astype(jnp.bfloat16)                                   # (M, 1, B*W)
    im3 = xf3[M:].astype(jnp.bfloat16)
    wrbd = wrbd_ref[0]                                                   # (M, B*W, B*W) bf16
    wibd = wibd_ref[0]
    dn = (((2,), (1,)), ((0,), (0,)))
    rr = lax.dot_general(re3, wrbd, dn, preferred_element_type=jnp.float32)
    ii = lax.dot_general(im3, wibd, dn, preferred_element_type=jnp.float32)
    ri = lax.dot_general(re3, wibd, dn, preferred_element_type=jnp.float32)
    ir = lax.dot_general(im3, wrbd, dn, preferred_element_type=jnp.float32)
    out_re = (rr - ii)[:, 0, :].astype(jnp.bfloat16)                     # (M, B*W)
    out_im = (ri + ir)[:, 0, :].astype(jnp.bfloat16)
    # inverse truncated ortho irfft (Re / Im parts as two 2-D matmuls, no concat)
    x1 = (jnp.dot(grt_ref[...], out_re, preferred_element_type=jnp.float32)
          + jnp.dot(git_ref[...], out_im, preferred_element_type=jnp.float32))  # (N, B*W)

    # ---- 1x1 Conv1d == pointwise channel matmul (block-diag over batch)
    x2 = jnp.dot(a_bf, cwbd_ref[0], preferred_element_type=jnp.float32) + cb_ref[0]

    y = x1 + x2

    # ---- BatchNorm1d, training-mode stats, two-pass (mean, centered variance)
    mean_w = _fold_b(jnp.sum(y, axis=0, keepdims=True)) * inv_cnt        # (1, W)
    mean_l = _tile_b(mean_w)                                             # (1, B*W)
    d = y - mean_l
    var_w = _fold_b(jnp.sum(d * d, axis=0, keepdims=True)) * inv_cnt     # (1, W)
    scale_l = _tile_b(lax.rsqrt(var_w + _BN_EPS))                        # (1, B*W)
    y = d * (scale_l * g_ref[0]) + bt_ref[0]

    is_last = blk == nblk - 1

    @pl.when(jnp.logical_not(is_last))                                   # ReLU after bn0..bn2
    def _():
        a_scr[...] = jnp.maximum(y, 0.0)

    @pl.when(is_last)                                                    # head: fc1 + ReLU, fc2
    def _():
        h = jnp.maximum(
            jnp.dot(y.astype(jnp.bfloat16), fc1bd_ref[...],
                    preferred_element_type=jnp.float32) + fc1b_ref[...], 0.0)   # (N, B*128)
        o = jnp.dot(h.astype(jnp.bfloat16), fc2bd_ref[...],
                    preferred_element_type=jnp.float32) + fc2b_ref[...]         # (N, B)
        out_ref[...] = o


# --------------------------------------------------------------------------
# Glue: DFT matrices, block-diagonal weight packing, init, pallas_call wrapper.
# --------------------------------------------------------------------------
def _dft_matrices(n, modes):
    """Truncated ortho-normalized rfft / irfft matrices (first `modes` bins)."""
    k = jnp.arange(modes, dtype=jnp.float32)[:, None]           # (M, 1)
    t = jnp.arange(n, dtype=jnp.float32)[None, :]               # (1, N)
    theta = 2.0 * jnp.pi * k * t / n
    s = 1.0 / jnp.sqrt(jnp.float32(n))
    frt = jnp.cos(theta) * s                                    # (M, N)
    fit = -jnp.sin(theta) * s                                   # (M, N)
    kk = jnp.arange(modes)
    c = jnp.where(kk == 0, 1.0, 2.0).astype(jnp.float32)
    if n % 2 == 0:
        c = jnp.where(kk == n // 2, 1.0, c)
    grt = (jnp.cos(theta) * s * c[:, None]).T                   # (N, M)
    git = (-jnp.sin(theta) * s * c[:, None]).T                  # (N, M)
    return frt, fit, grt, git


def _blockdiag(w, b):
    """(a, c) -> (b*a, b*c) block-diagonal with b copies of w."""
    return jnp.kron(jnp.eye(b, dtype=w.dtype), w)


def init_params(key, modes, width, hidden=128):
    ks = iter(jax.random.split(key, 64))
    scale = 1.0 / (width * width)
    b_w = 1.0 / (width ** 0.5)
    b_h = 1.0 / (hidden ** 0.5)
    params = {
        "fc0_w": jax.random.uniform(next(ks), (2, width), jnp.float32, -0.5, 0.5),
        "fc0_b": jax.random.uniform(next(ks), (1, width), jnp.float32, -0.5, 0.5),
        "blocks": [],
        "fc1_w": jax.random.uniform(next(ks), (width, hidden), jnp.float32, -b_w, b_w),
        "fc1_b": jax.random.uniform(next(ks), (1, hidden), jnp.float32, -b_w, b_w),
        "fc2_w": jax.random.uniform(next(ks), (1, hidden), jnp.float32, -b_h, b_h),
        "fc2_b": jax.random.uniform(next(ks), (1, 1), jnp.float32, -b_h, b_h),
    }
    for _ in range(4):
        params["blocks"].append(dict(
            # spectral weights stored as (modes, out_ch, in_ch)
            swr=scale * jax.random.uniform(next(ks), (modes, width, width), jnp.float32),
            swi=scale * jax.random.uniform(next(ks), (modes, width, width), jnp.float32),
            cw=jax.random.uniform(next(ks), (width, width), jnp.float32, -b_w, b_w),
            cb=jax.random.uniform(next(ks), (1, width), jnp.float32, -b_w, b_w),
            gamma=jnp.ones((1, width), jnp.float32),
            beta=jnp.zeros((1, width), jnp.float32),
        ))
    return params


def net1d_forward(x, params, modes):
    B, N, _ = x.shape
    W = params["fc0_w"].shape[1]
    HID = params["fc1_w"].shape[1]
    BW, BH, M = B * W, B * HID, modes
    assert N % 8 == 0 and M <= N // 2

    frt, fit, grt, git = _dft_matrices(N, M)
    f2 = jnp.concatenate([frt, fit], axis=0).astype(jnp.bfloat16)   # (2M, N)
    grt_b = grt.astype(jnp.bfloat16)                                # (N, M)
    git_b = git.astype(jnp.bfloat16)

    eye_b = jnp.eye(B, dtype=jnp.float32)
    # n-major input layout handled once in the wrapper
    x_nm = jnp.transpose(x, (1, 0, 2)).reshape(N, 2 * B)            # (N, 2B)
    fc0bd = _blockdiag(params["fc0_w"], B)                          # (2B, BW) f32
    fc0b = jnp.tile(params["fc0_b"], (1, B))                        # (1, BW)

    wr_all, wi_all, cw_all, cb_all, g_all, bt_all = [], [], [], [], [], []
    for blk in params["blocks"]:
        wio_r = jnp.transpose(blk["swr"], (0, 2, 1))                # (M, in, out)
        wio_i = jnp.transpose(blk["swi"], (0, 2, 1))
        wr_all.append(jax.vmap(lambda w: jnp.kron(eye_b, w))(wio_r))
        wi_all.append(jax.vmap(lambda w: jnp.kron(eye_b, w))(wio_i))
        cw_all.append(_blockdiag(blk["cw"], B))
        cb_all.append(jnp.tile(blk["cb"], (1, B)))
        g_all.append(jnp.tile(blk["gamma"], (1, B)))
        bt_all.append(jnp.tile(blk["beta"], (1, B)))
    wrbd = jnp.stack(wr_all).astype(jnp.bfloat16)                   # (4, M, BW, BW)
    wibd = jnp.stack(wi_all).astype(jnp.bfloat16)
    cwbd = jnp.stack(cw_all).astype(jnp.bfloat16)                   # (4, BW, BW)
    cb_a = jnp.stack(cb_all)                                        # (4, 1, BW) f32
    g_a = jnp.stack(g_all)
    bt_a = jnp.stack(bt_all)

    fc1bd = _blockdiag(params["fc1_w"], B).astype(jnp.bfloat16)     # (BW, BH)
    fc1b = jnp.tile(params["fc1_b"], (1, B))                        # (1, BH)
    fc2bd = _blockdiag(params["fc2_w"].T, B).astype(jnp.bfloat16)   # (BH, B)
    fc2b = jnp.tile(params["fc2_b"], (1, B))                        # (1, B)

    inputs = [x_nm, fc0bd, fc0b, f2, grt_b, git_b, wrbd, wibd, cwbd,
              cb_a, g_a, bt_a, fc1bd, fc1b, fc2bd, fc2b]
    nblk = len(params["blocks"])

    def _full_spec(arr):
        nd = arr.ndim
        return pl.BlockSpec(arr.shape, lambda i, _nd=nd: (0,) * _nd)

    def _per_block_spec(arr):
        nd = arr.ndim
        return pl.BlockSpec((1,) + arr.shape[1:],
                            lambda i, _nd=nd: (i,) + (0,) * (_nd - 1))

    in_specs = [
        _full_spec(x_nm), _full_spec(fc0bd), _full_spec(fc0b),
        _full_spec(f2), _full_spec(grt_b), _full_spec(git_b),
        _per_block_spec(wrbd), _per_block_spec(wibd), _per_block_spec(cwbd),
        _per_block_spec(cb_a), _per_block_spec(g_a), _per_block_spec(bt_a),
        _full_spec(fc1bd), _full_spec(fc1b), _full_spec(fc2bd), _full_spec(fc2b),
    ]
    out_specs = pl.BlockSpec((N, B), lambda i: (0, 0))

    # Explicit VMEM budget (review: v7x has only 64 MiB / 32 MiB scoped default).
    in_bytes = sum(int(a.size) * a.dtype.itemsize for a in inputs)
    vmem_limit = int(min(96 * 2**20, max(8 * 2**20, 4 * in_bytes)))

    out = pl.pallas_call(
        _net1d_block_kernel,
        out_shape=jax.ShapeDtypeStruct((N, B), jnp.float32),
        grid_spec=pltpu.PrefetchScalarGridSpec(
            num_scalar_prefetch=0,
            grid=(nblk,),
            in_specs=in_specs,
            out_specs=out_specs,
            scratch_shapes=[pltpu.VMEM((N, BW), jnp.float32)],
        ),
        compiler_params=pltpu.CompilerParams(
            dimension_semantics=("arbitrary",),
            vmem_limit_bytes=vmem_limit,
        ),
    )(*inputs)
    return out.T                                                    # (B, N) == torch .squeeze()


# Pure-JAX reference (uses jnp.fft) for a sanity check.
def _spectral_conv_ref(h, swr, swi):
    B, N, _ = h.shape
    M, Wout, _ = swr.shape
    hf = jnp.fft.rfft(h, axis=1, norm="ortho")[:, :M, :]            # (B, M, Win)
    of = jnp.einsum("bki,koi->bko", hf, swr + 1j * swi)             # (B, M, Wout)
    full = jnp.zeros((B, N // 2 + 1, Wout), dtype=of.dtype).at[:, :M, :].set(of)
    return jnp.fft.irfft(full, n=N, axis=1, norm="ortho")


def _net1d_ref(x, params):
    h = x @ params["fc0_w"] + params["fc0_b"]
    for i, blk in enumerate(params["blocks"]):
        x1 = _spectral_conv_ref(h, blk["swr"], blk["swi"])
        x2 = h @ blk["cw"] + blk["cb"]
        y = x1 + x2
        mean = jnp.mean(y, axis=(0, 1), keepdims=True)
        var = jnp.mean((y - mean) ** 2, axis=(0, 1), keepdims=True)
        y = (y - mean) / jnp.sqrt(var + _BN_EPS) * blk["gamma"] + blk["beta"]
        h = jnp.maximum(y, 0.0) if i < 3 else y
    h = jnp.maximum(h @ params["fc1_w"] + params["fc1_b"], 0.0)
    out = h @ params["fc2_w"].T + params["fc2_b"]
    return out[..., 0]


if __name__ == "__main__":
    MODES, WIDTH = 8, 32          # small versions of modes=16, width=64
    B, N = 2, 64                  # input layout: (batch, spatial, 2 features)

    key = jax.random.PRNGKey(0)
    kx, kp = jax.random.split(key)
    x = jax.random.normal(kx, (B, N, 2), jnp.float32)
    params = init_params(kp, MODES, WIDTH)

    out = jax.block_until_ready(net1d_forward(x, params, MODES))
    ref = jax.block_until_ready(_net1d_ref(x, params))

    assert out.shape == (B, N)
    assert bool(jnp.all(jnp.isfinite(out)))
    max_err = float(jnp.max(jnp.abs(out - ref)))
    assert max_err < 5e-2, f"mismatch vs reference: {max_err}"
    print("KERNEL_OK")
</pallas_src>

<mosaic_0001>
module attributes {stable_mosaic.version = 11 : i64} {
  func.func @_net1d_block_kernel(%arg0: i32, %arg1: memref<64x4xf32, #tpu.memory_space<vmem>>, %arg2: memref<4x64xf32, #tpu.memory_space<vmem>>, %arg3: memref<1x64xf32, #tpu.memory_space<vmem>>, %arg4: memref<16x64xbf16, #tpu.memory_space<vmem>>, %arg5: memref<64x8xbf16, #tpu.memory_space<vmem>>, %arg6: memref<64x8xbf16, #tpu.memory_space<vmem>>, %arg7: memref<1x8x64x64xbf16, #tpu.memory_space<vmem>>, %arg8: memref<1x8x64x64xbf16, #tpu.memory_space<vmem>>, %arg9: memref<1x64x64xbf16, #tpu.memory_space<vmem>>, %arg10: memref<1x1x64xf32, #tpu.memory_space<vmem>>, %arg11: memref<1x1x64xf32, #tpu.memory_space<vmem>>, %arg12: memref<1x1x64xf32, #tpu.memory_space<vmem>>, %arg13: memref<64x256xbf16, #tpu.memory_space<vmem>>, %arg14: memref<1x256xf32, #tpu.memory_space<vmem>>, %arg15: memref<256x2xbf16, #tpu.memory_space<vmem>>, %arg16: memref<1x2xf32, #tpu.memory_space<vmem>>, %arg17: memref<64x2xf32, #tpu.memory_space<vmem>>, %arg18: memref<64x64xf32, #tpu.memory_space<vmem>>) attributes {dimension_semantics = [#tpu.dimension_semantics<arbitrary>], iteration_bounds = array<i64: 4>, scalar_prefetch = 0 : i64, scratch_operands = 1 : i64, tpu.core_type = #tpu.core_type<tc>, window_params = [{pipeline_mode = #tpu.pipeline_mode<synchronous>, transform_indices = @transform_0, window_bounds = array<i64: 64, 4>}, {pipeline_mode = #tpu.pipeline_mode<synchronous>, transform_indices = @transform_1, window_bounds = array<i64: 4, 64>}, {pipeline_mode = #tpu.pipeline_mode<synchronous>, transform_indices = @transform_2, window_bounds = array<i64: 1, 64>}, {pipeline_mode = #tpu.pipeline_mode<synchronous>, transform_indices = @transform_3, window_bounds = array<i64: 16, 64>}, {pipeline_mode = #tpu.pipeline_mode<synchronous>, transform_indices = @transform_4, window_bounds = array<i64: 64, 8>}, {pipeline_mode = #tpu.pipeline_mode<synchronous>, transform_indices = @transform_5, window_bounds = array<i64: 64, 8>}, {transform_indices = @transform_6, window_bounds = array<i64: 1, 8, 64, 64>}, {transform_indices = @transform_7, window_bounds = array<i64: 1, 8, 64, 64>}, {transform_indices = @transform_8, window_bounds = array<i64: 1, 64, 64>}, {transform_indices = @transform_9, window_bounds = array<i64: 1, 1, 64>}, {transform_indices = @transform_10, window_bounds = array<i64: 1, 1, 64>}, {transform_indices = @transform_11, window_bounds = array<i64: 1, 1, 64>}, {pipeline_mode = #tpu.pipeline_mode<synchronous>, transform_indices = @transform_12, window_bounds = array<i64: 64, 256>}, {pipeline_mode = #tpu.pipeline_mode<synchronous>, transform_indices = @transform_13, window_bounds = array<i64: 1, 256>}, {pipeline_mode = #tpu.pipeline_mode<synchronous>, transform_indices = @transform_14, window_bounds = array<i64: 256, 2>}, {pipeline_mode = #tpu.pipeline_mode<synchronous>, transform_indices = @transform_15, window_bounds = array<i64: 1, 2>}, {pipeline_mode = #tpu.pipeline_mode<synchronous>, transform_indices = @transform_16, window_bounds = array<i64: 64, 2>}]} {
    %c0_i32 = arith.constant 0 : i32
    %0 = arith.cmpi eq, %arg0, %c0_i32 : i32
    %1 = arith.extui %0 : i1 to i32
    %c0_i32_0 = arith.constant 0 : i32
    %2 = arith.cmpi ne, %1, %c0_i32_0 : i32
    scf.if %2 {
      %c0_42 = arith.constant 0 : index
      %c0_43 = arith.constant 0 : index
      %76 = vector.load %arg1[%c0_42, %c0_43] : memref<64x4xf32, #tpu.memory_space<vmem>>, vector<64x4xf32>
      %c0_44 = arith.constant 0 : index
      %c0_45 = arith.constant 0 : index
      %77 = vector.load %arg2[%c0_44, %c0_45] : memref<4x64xf32, #tpu.memory_space<vmem>>, vector<4x64xf32>
      %cst_46 = arith.constant dense<0.000000e+00> : vector<64x64xf32>
      %78 = tpu.matmul %76, %77, %cst_46 {dimension_numbers = #tpu.dot_dimension_numbers<[1], [0], [0], [1], [0, 0, 1, 1], [], []>} : vector<64x4xf32>, vector<4x64xf32>, vector<64x64xf32> -> vector<64x64xf32>
      %c0_47 = arith.constant 0 : index
      %c0_48 = arith.constant 0 : index
      %79 = vector.load %arg3[%c0_47, %c0_48] : memref<1x64xf32, #tpu.memory_space<vmem>>, vector<1x64xf32>
      %80 = vector.broadcast %79 : vector<1x64xf32> to vector<64x64xf32>
      %81 = arith.addf %78, %80 : vector<64x64xf32>
      %c0_49 = arith.constant 0 : index
      %c0_50 = arith.constant 0 : index
      %82 = vector.load %arg18[%c0_49, %c0_50] : memref<64x64xf32, #tpu.memory_space<vmem>>, vector<64x64xf32>
      tpu.vector_store %arg18[%c0_49, %c0_50], %81 {strides = array<i32>} : memref<64x64xf32, #tpu.memory_space<vmem>>, vector<64x64xf32>,
    } else {
    }
    %c0 = arith.constant 0 : index
    %c0_1 = arith.constant 0 : index
    %3 = vector.load %arg18[%c0, %c0_1] : memref<64x64xf32, #tpu.memory_space<vmem>>, vector<64x64xf32>
    %4 = arith.truncf %3 : vector<64x64xf32> to vector<64x64xbf16>
    %c0_2 = arith.constant 0 : index
    %c0_3 = arith.constant 0 : index
    %5 = vector.load %arg4[%c0_2, %c0_3] : memref<16x64xbf16, #tpu.memory_space<vmem>>, vector<16x64xbf16>
    %cst = arith.constant dense<0.000000e+00> : vector<16x64xf32>
    %6 = tpu.matmul %5, %4, %cst {dimension_numbers = #tpu.dot_dimension_numbers<[1], [0], [0], [1], [0, 0, 1, 1], [], []>} : vector<16x64xbf16>, vector<64x64xbf16>, vector<16x64xf32> -> vector<16x64xf32>
    %7 = vector.shape_cast %6 : vector<16x64xf32> to vector<16x1x64xf32>
    %8 = vector.extract_strided_slice %7 {offsets = [0, 0, 0], sizes = [8, 1, 64], strides = [1, 1, 1]} : vector<16x1x64xf32> to vector<8x1x64xf32>
    %9 = arith.truncf %8 : vector<8x1x64xf32> to vector<8x1x64xbf16>
    %10 = vector.extract_strided_slice %7 {offsets = [8, 0, 0], sizes = [8, 1, 64], strides = [1, 1, 1]} : vector<16x1x64xf32> to vector<8x1x64xf32>
    %11 = arith.truncf %10 : vector<8x1x64xf32> to vector<8x1x64xbf16>
    %c0_4 = arith.constant 0 : index
    %c0_5 = arith.constant 0 : index
    %c0_6 = arith.constant 0 : index
    %c0_7 = arith.constant 0 : index
    %12 = vector.load %arg7[%c0_4, %c0_5, %c0_6, %c0_7] : memref<1x8x64x64xbf16, #tpu.memory_space<vmem>>, vector<1x8x64x64xbf16>
    %13 = vector.shape_cast %12 : vector<1x8x64x64xbf16> to vector<8x64x64xbf16>
    %c0_8 = arith.constant 0 : index
    %c0_9 = arith.constant 0 : index
    %c0_10 = arith.constant 0 : index
    %c0_11 = arith.constant 0 : index
    %14 = vector.load %arg8[%c0_8, %c0_9, %c0_10, %c0_11] : memref<1x8x64x64xbf16, #tpu.memory_space<vmem>>, vector<1x8x64x64xbf16>
    %15 = vector.shape_cast %14 : vector<1x8x64x64xbf16> to vector<8x64x64xbf16>
    %cst_12 = arith.constant dense<0.000000e+00> : vector<8x1x64xf32>
    %16 = tpu.matmul %9, %13, %cst_12 {dimension_numbers = #tpu.dot_dimension_numbers<[2], [1], [1], [2], [0, 0, 0, 1, 1, 2], [0], [0]>} : vector<8x1x64xbf16>, vector<8x64x64xbf16>, vector<8x1x64xf32> -> vector<8x1x64xf32>
    %cst_13 = arith.constant dense<0.000000e+00> : vector<8x1x64xf32>
    %17 = tpu.matmul %11, %15, %cst_13 {dimension_numbers = #tpu.dot_dimension_numbers<[2], [1], [1], [2], [0, 0, 0, 1, 1, 2], [0], [0]>} : vector<8x1x64xbf16>, vector<8x64x64xbf16>, vector<8x1x64xf32> -> vector<8x1x64xf32>
    %cst_14 = arith.constant dense<0.000000e+00> : vector<8x1x64xf32>
    %18 = tpu.matmul %9, %15, %cst_14 {dimension_numbers = #tpu.dot_dimension_numbers<[2], [1], [1], [2], [0, 0, 0, 1, 1, 2], [0], [0]>} : vector<8x1x64xbf16>, vector<8x64x64xbf16>, vector<8x1x64xf32> -> vector<8x1x64xf32>
    %cst_15 = arith.constant dense<0.000000e+00> : vector<8x1x64xf32>
    %19 = tpu.matmul %11, %13, %cst_15 {dimension_numbers = #tpu.dot_dimension_numbers<[2], [1], [1], [2], [0, 0, 0, 1, 1, 2], [0], [0]>} : vector<8x1x64xbf16>, vector<8x64x64xbf16>, vector<8x1x64xf32> -> vector<8x1x64xf32>
    %20 = arith.subf %16, %17 : vector<8x1x64xf32>
    %21 = vector.shape_cast %20 : vector<8x1x64xf32> to vector<8x64xf32>
    %22 = arith.truncf %21 : vector<8x64xf32> to vector<8x64xbf16>
    %23 = arith.addf %18, %19 : vector<8x1x64xf32>
    %24 = vector.shape_cast %23 : vector<8x1x64xf32> to vector<8x64xf32>
    %25 = arith.truncf %24 : vector<8x64xf32> to vector<8x64xbf16>
    %c0_16 = arith.constant 0 : index
    %c0_17 = arith.constant 0 : index
    %26 = vector.load %arg5[%c0_16, %c0_17] : memref<64x8xbf16, #tpu.memory_space<vmem>>, vector<64x8xbf16>
    %cst_18 = arith.constant dense<0.000000e+00> : vector<64x64xf32>
    %27 = tpu.matmul %26, %22, %cst_18 {dimension_numbers = #tpu.dot_dimension_numbers<[1], [0], [0], [1], [0, 0, 1, 1], [], []>} : vector<64x8xbf16>, vector<8x64xbf16>, vector<64x64xf32> -> vector<64x64xf32>
    %c0_19 = arith.constant 0 : index
    %c0_20 = arith.constant 0 : index
    %28 = vector.load %arg6[%c0_19, %c0_20] : memref<64x8xbf16, #tpu.memory_space<vmem>>, vector<64x8xbf16>
    %cst_21 = arith.constant dense<0.000000e+00> : vector<64x64xf32>
    %29 = tpu.matmul %28, %25, %cst_21 {dimension_numbers = #tpu.dot_dimension_numbers<[1], [0], [0], [1], [0, 0, 1, 1], [], []>} : vector<64x8xbf16>, vector<8x64xbf16>, vector<64x64xf32> -> vector<64x64xf32>
    %30 = arith.addf %27, %29 : vector<64x64xf32>
    %c0_22 = arith.constant 0 : index
    %c0_23 = arith.constant 0 : index
    %c0_24 = arith.constant 0 : index
    %31 = vector.load %arg9[%c0_22, %c0_23, %c0_24] : memref<1x64x64xbf16, #tpu.memory_space<vmem>>, vector<1x64x64xbf16>
    %32 = vector.shape_cast %31 : vector<1x64x64xbf16> to vector<64x64xbf16>
    %cst_25 = arith.constant dense<0.000000e+00> : vector<64x64xf32>
    %33 = tpu.matmul %4, %32, %cst_25 {dimension_numbers = #tpu.dot_dimension_numbers<[1], [0], [0], [1], [0, 0, 1, 1], [], []>} : vector<64x64xbf16>, vector<64x64xbf16>, vector<64x64xf32> -> vector<64x64xf32>
    %c0_26 = arith.constant 0 : index
    %c0_27 = arith.constant 0 : index
    %c0_28 = arith.constant 0 : index
    %34 = vector.load %arg10[%c0_26, %c0_27, %c0_28] : memref<1x1x64xf32, #tpu.memory_space<vmem>>, vector<1x1x64xf32>
    %35 = vector.shape_cast %34 : vector<1x1x64xf32> to vector<1x64xf32>
    %36 = vector.broadcast %35 : vector<1x64xf32> to vector<64x64xf32>
    %37 = arith.addf %33, %36 : vector<64x64xf32>
    %38 = arith.addf %30, %37 : vector<64x64xf32>
    %cst_29 = arith.constant dense<0.000000e+00> : vector<64xf32>
    %39 = vector.multi_reduction <add>, %38, %cst_29 [0] : vector<64x64xf32> to vector<64xf32>
    %40 = vector.shape_cast %39 : vector<64xf32> to vector<1x64xf32>
    %41 = vector.extract_strided_slice %40 {offsets = [0, 0], sizes = [1, 32], strides = [1, 1]} : vector<1x64xf32> to vector<1x32xf32>
    %42 = vector.extract_strided_slice %40 {offsets = [0, 32], sizes = [1, 32], strides = [1, 1]} : vector<1x64xf32> to vector<1x32xf32>
    %43 = arith.addf %41, %42 : vector<1x32xf32>
    %cst_30 = arith.constant 7.812500e-03 : f32
    %44 = vector.broadcast %cst_30 : f32 to vector<1x32xf32>
    %45 = arith.mulf %43, %44 : vector<1x32xf32>
    %46 = tpu.concatenate %45, %45 in 1 : vector<1x32xf32>, vector<1x32xf32> -> vector<1x64xf32>
    %47 = vector.broadcast %46 : vector<1x64xf32> to vector<64x64xf32>
    %48 = arith.subf %38, %47 : vector<64x64xf32>
    %49 = arith.mulf %48, %48 : vector<64x64xf32>
    %cst_31 = arith.constant dense<0.000000e+00> : vector<64xf32>
    %50 = vector.multi_reduction <add>, %49, %cst_31 [0] : vector<64x64xf32> to vector<64xf32>
    %51 = vector.shape_cast %50 : vector<64xf32> to vector<1x64xf32>
    %52 = vector.extract_strided_slice %51 {offsets = [0, 0], sizes = [1, 32], strides = [1, 1]} : vector<1x64xf32> to vector<1x32xf32>
    %53 = vector.extract_strided_slice %51 {offsets = [0, 32], sizes = [1, 32], strides = [1, 1]} : vector<1x64xf32> to vector<1x32xf32>
    %54 = arith.addf %52, %53 : vector<1x32xf32>
    %cst_32 = arith.constant 7.812500e-03 : f32
    %55 = vector.broadcast %cst_32 : f32 to vector<1x32xf32>
    %56 = arith.mulf %54, %55 : vector<1x32xf32>
    %cst_33 = arith.constant 9.99999974E-6 : f32
    %57 = vector.broadcast %cst_33 : f32 to vector<1x32xf32>
    %58 = arith.addf %56, %57 : vector<1x32xf32>
    %59 = math.rsqrt %58 : vector<1x32xf32>
    %60 = tpu.concatenate %59, %59 in 1 : vector<1x32xf32>, vector<1x32xf32> -> vector<1x64xf32>
    %c0_34 = arith.constant 0 : index
    %c0_35 = arith.constant 0 : index
    %c0_36 = arith.constant 0 : index
    %61 = vector.load %arg11[%c0_34, %c0_35, %c0_36] : memref<1x1x64xf32, #tpu.memory_space<vmem>>, vector<1x1x64xf32>
    %62 = vector.shape_cast %61 : vector<1x1x64xf32> to vector<1x64xf32>
    %63 = arith.mulf %60, %62 : vector<1x64xf32>
    %64 = vector.broadcast %63 : vector<1x64xf32> to vector<64x64xf32>
    %65 = arith.mulf %48, %64 : vector<64x64xf32>
    %c0_37 = arith.constant 0 : index
    %c0_38 = arith.constant 0 : index
    %c0_39 = arith.constant 0 : index
    %66 = vector.load %arg12[%c0_37, %c0_38, %c0_39] : memref<1x1x64xf32, #tpu.memory_space<vmem>>, vector<1x1x64xf32>
    %67 = vector.shape_cast %66 : vector<1x1x64xf32> to vector<1x64xf32>
    %68 = vector.broadcast %67 : vector<1x64xf32> to vector<64x64xf32>
    %69 = arith.addf %65, %68 : vector<64x64xf32>
    %c3_i32 = arith.constant 3 : i32
    %70 = arith.cmpi eq, %arg0, %c3_i32 : i32
    %true = arith.constant true
    %71 = arith.xori %70, %true : i1
    %72 = arith.extui %71 : i1 to i32
    %c0_i32_40 = arith.constant 0 : i32
    %73 = arith.cmpi ne, %72, %c0_i32_40 : i32
    scf.if %73 {
      %cst_42 = arith.constant 0.000000e+00 : f32
      %76 = vector.broadcast %cst_42 : f32 to vector<64x64xf32>
      %77 = arith.maximumf %69, %76 : vector<64x64xf32>
      %c0_43 = arith.constant 0 : index
      %c0_44 = arith.constant 0 : index
      %78 = vector.load %arg18[%c0_43, %c0_44] : memref<64x64xf32, #tpu.memory_space<vmem>>, vector<64x64xf32>
      tpu.vector_store %arg18[%c0_43, %c0_44], %77 {strides = array<i32>} : memref<64x64xf32, #tpu.memory_space<vmem>>, vector<64x64xf32>,
    } else {
    }
    %74 = arith.extui %70 : i1 to i32
    %c0_i32_41 = arith.constant 0 : i32
    %75 = arith.cmpi ne, %74, %c0_i32_41 : i32
    scf.if %75 {
      %76 = arith.truncf %69 : vector<64x64xf32> to vector<64x64xbf16>
      %c0_42 = arith.constant 0 : index
      %c0_43 = arith.constant 0 : index
      %77 = vector.load %arg13[%c0_42, %c0_43] : memref<64x256xbf16, #tpu.memory_space<vmem>>, vector<64x256xbf16>
      %cst_44 = arith.constant dense<0.000000e+00> : vector<64x256xf32>
      %78 = tpu.matmul %76, %77, %cst_44 {dimension_numbers = #tpu.dot_dimension_numbers<[1], [0], [0], [1], [0, 0, 1, 1], [], []>} : vector<64x64xbf16>, vector<64x256xbf16>, vector<64x256xf32> -> vector<64x256xf32>
      %c0_45 = arith.constant 0 : index
      %c0_46 = arith.constant 0 : index
      %79 = vector.load %arg14[%c0_45, %c0_46] : memref<1x256xf32, #tpu.memory_space<vmem>>, vector<1x256xf32>
      %80 = vector.broadcast %79 : vector<1x256xf32> to vector<64x256xf32>
      %81 = arith.addf %78, %80 : vector<64x256xf32>
      %cst_47 = arith.constant 0.000000e+00 : f32
      %82 = vector.broadcast %cst_47 : f32 to vector<64x256xf32>
      %83 = arith.maximumf %81, %82 : vector<64x256xf32>
      %84 = arith.truncf %83 : vector<64x256xf32> to vector<64x256xbf16>
      %c0_48 = arith.constant 0 : index
      %c0_49 = arith.constant 0 : index
      %85 = vector.load %arg15[%c0_48, %c0_49] : memref<256x2xbf16, #tpu.memory_space<vmem>>, vector<256x2xbf16>
      %cst_50 = arith.constant dense<0.000000e+00> : vector<64x2xf32>
      %86 = tpu.matmul %84, %85, %cst_50 {dimension_numbers = #tpu.dot_dimension_numbers<[1], [0], [0], [1], [0, 0, 1, 1], [], []>} : vector<64x256xbf16>, vector<256x2xbf16>, vector<64x2xf32> -> vector<64x2xf32>
      %c0_51 = arith.constant 0 : index
      %c0_52 = arith.constant 0 : index
      %87 = vector.load %arg16[%c0_51, %c0_52] : memref<1x2xf32, #tpu.memory_space<vmem>>, vector<1x2xf32>
      %88 = vector.broadcast %87 : vector<1x2xf32> to vector<64x2xf32>
      %89 = arith.addf %86, %88 : vector<64x2xf32>
      %c0_53 = arith.constant 0 : index
      %c0_54 = arith.constant 0 : index
      %90 = vector.load %arg17[%c0_53, %c0_54] : memref<64x2xf32, #tpu.memory_space<vmem>>, vector<64x2xf32>
      tpu.vector_store %arg17[%c0_53, %c0_54], %89 {strides = array<i32>} : memref<64x2xf32, #tpu.memory_space<vmem>>, vector<64x2xf32>,
    } else {
    }
    return
  }
  func.func @transform_0(%arg0: i32) -> (i32, i32) {
    %c0_i32 = arith.constant 0 : i32
    %c0_i32_0 = arith.constant 0 : i32
    %c0_i32_1 = arith.constant 0 : i32
    return %c0_i32, %c0_i32_0 : i32, i32
  }
  func.func @transform_1(%arg0: i32) -> (i32, i32) {
    %c0_i32 = arith.constant 0 : i32
    %c0_i32_0 = arith.constant 0 : i32
    %c0_i32_1 = arith.constant 0 : i32
    return %c0_i32, %c0_i32_0 : i32, i32
  }
  func.func @transform_2(%arg0: i32) -> (i32, i32) {
    %c0_i32 = arith.constant 0 : i32
    %c0_i32_0 = arith.constant 0 : i32
    %c0_i32_1 = arith.constant 0 : i32
    return %c0_i32, %c0_i32_0 : i32, i32
  }
  func.func @transform_3(%arg0: i32) -> (i32, i32) {
    %c0_i32 = arith.constant 0 : i32
    %c0_i32_0 = arith.constant 0 : i32
    %c0_i32_1 = arith.constant 0 : i32
    return %c0_i32, %c0_i32_0 : i32, i32
  }
  func.func @transform_4(%arg0: i32) -> (i32, i32) {
    %c0_i32 = arith.constant 0 : i32
    %c0_i32_0 = arith.constant 0 : i32
    %c0_i32_1 = arith.constant 0 : i32
    return %c0_i32, %c0_i32_0 : i32, i32
  }
  func.func @transform_5(%arg0: i32) -> (i32, i32) {
    %c0_i32 = arith.constant 0 : i32
    %c0_i32_0 = arith.constant 0 : i32
    %c0_i32_1 = arith.constant 0 : i32
    return %c0_i32, %c0_i32_0 : i32, i32
  }
  func.func @transform_6(%arg0: i32) -> (i32, i32, i32, i32) {
    %c0_i32 = arith.constant 0 : i32
    %c0_i32_0 = arith.constant 0 : i32
    %c0_i32_1 = arith.constant 0 : i32
    %c0_i32_2 = arith.constant 0 : i32
    return %arg0, %c0_i32, %c0_i32_0, %c0_i32_1 : i32, i32, i32, i32
  }
  func.func @transform_7(%arg0: i32) -> (i32, i32, i32, i32) {
    %c0_i32 = arith.constant 0 : i32
    %c0_i32_0 = arith.constant 0 : i32
    %c0_i32_1 = arith.constant 0 : i32
    %c0_i32_2 = arith.constant 0 : i32
    return %arg0, %c0_i32, %c0_i32_0, %c0_i32_1 : i32, i32, i32, i32
  }
  func.func @transform_8(%arg0: i32) -> (i32, i32, i32) {
    %c0_i32 = arith.constant 0 : i32
    %c0_i32_0 = arith.constant 0 : i32
    %c0_i32_1 = arith.constant 0 : i32
    return %arg0, %c0_i32, %c0_i32_0 : i32, i32, i32
  }
  func.func @transform_9(%arg0: i32) -> (i32, i32, i32) {
    %c0_i32 = arith.constant 0 : i32
    %c0_i32_0 = arith.constant 0 : i32
    %c0_i32_1 = arith.constant 0 : i32
    return %arg0, %c0_i32, %c0_i32_0 : i32, i32, i32
  }
  func.func @transform_10(%arg0: i32) -> (i32, i32, i32) {
    %c0_i32 = arith.constant 0 : i32
    %c0_i32_0 = arith.constant 0 : i32
    %c0_i32_1 = arith.constant 0 : i32
    return %arg0, %c0_i32, %c0_i32_0 : i32, i32, i32
  }
  func.func @transform_11(%arg0: i32) -> (i32, i32, i32) {
    %c0_i32 = arith.constant 0 : i32
    %c0_i32_0 = arith.constant 0 : i32
    %c0_i32_1 = arith.constant 0 : i32
    return %arg0, %c0_i32, %c0_i32_0 : i32, i32, i32
  }
  func.func @transform_12(%arg0: i32) -> (i32, i32) {
    %c0_i32 = arith.constant 0 : i32
    %c0_i32_0 = arith.constant 0 : i32
    %c0_i32_1 = arith.constant 0 : i32
    return %c0_i32, %c0_i32_0 : i32, i32
  }
  func.func @transform_13(%arg0: i32) -> (i32, i32) {
    %c0_i32 = arith.constant 0 : i32
    %c0_i32_0 = arith.constant 0 : i32
    %c0_i32_1 = arith.constant 0 : i32
    return %c0_i32, %c0_i32_0 : i32, i32
  }
  func.func @transform_14(%arg0: i32) -> (i32, i32) {
    %c0_i32 = arith.constant 0 : i32
    %c0_i32_0 = arith.constant 0 : i32
    %c0_i32_1 = arith.constant 0 : i32
    return %c0_i32, %c0_i32_0 : i32, i32
  }
  func.func @transform_15(%arg0: i32) -> (i32, i32) {
    %c0_i32 = arith.constant 0 : i32
    %c0_i32_0 = arith.constant 0 : i32
    %c0_i32_1 = arith.constant 0 : i32
    return %c0_i32, %c0_i32_0 : i32, i32
  }
  func.func @transform_16(%arg0: i32) -> (i32, i32) {
    %c0_i32 = arith.constant 0 : i32
    %c0_i32_0 = arith.constant 0 : i32
    %c0_i32_1 = arith.constant 0 : i32
    return %c0_i32, %c0_i32_0 : i32, i32
  }
}

</mosaic_0001>

<bundles_post_ra>
// kernel: tpu_custom_call.1
= control target key start
LH: loop header
LB: loop body
LE: loop exit
PB: predicated region body
PF: predicated region fallthrough
CT: control target
= control target key end

     0   :  { %s6359_s0 = inlined_call_operand.vmem [shape: f32[64,4], index: 0, kind: input, shape index: {}]   ;;  %s6360_s1 = inlined_call_operand.vmem [shape: f32[4,64], index: 1, kind: input, shape index: {}]   ;;  %s6361_s2 = inlined_call_operand.vmem [shape: f32[1,64], index: 2, kind: input, shape index: {}]   ;;  %s6362_s3 = inlined_call_operand.vmem [shape: bf16[16,64], index: 3, kind: input, shape index: {}]   ;;  %s6363_s4 = inlined_call_operand.vmem [shape: bf16[64,8], index: 4, kind: input, shape index: {}]   ;;  %s6364_s5 = inlined_call_operand.vmem [shape: bf16[64,8], index: 5, kind: input, shape index: {}]   ;;  %s6365_s6 = inlined_call_operand.hbm [shape: bf16[4,8,64,64], index: 6, kind: input, shape index: {}]   ;;  %s6366_s7 = inlined_call_operand.hbm [shape: bf16[4,8,64,64], index: 7, kind: input, shape index: {}]   ;;  %s6367_s8 = inlined_call_operand.vmem [shape: bf16[4,64,64], index: 8, kind: input, shape index: {}]   ;;  %s6368_s9 = inlined_call_operand.vmem [shape: f32[4,1,64], index: 9, kind: input, shape index: {}]   ;;  %s6369_s10 = inlined_call_operand.vmem [shape: f32[4,1,64], index: 10, kind: input, shape index: {}]   ;;  %s6370_s11 = inlined_call_operand.vmem [shape: f32[4,1,64], index: 11, kind: input, shape index: {}]   ;;  %s6371_s12 = inlined_call_operand.vmem [shape: bf16[64,256], index: 12, kind: input, shape index: {}]   ;;  %s6372_s13 = inlined_call_operand.vmem [shape: f32[1,256], index: 13, kind: input, shape index: {}]   ;;  %s6373_s14 = inlined_call_operand.vmem [shape: bf16[256,2], index: 14, kind: input, shape index: {}]   ;;  %s6374_s15 = inlined_call_operand.vmem [shape: f32[1,2], index: 15, kind: input, shape index: {}]   ;;  %s6375_s16 = inlined_call_operand.vmem [shape: f32[64,2], index: 16, kind: output, shape index: {}]  }
   0x1   :  { %6402 = sst [smem:[#allocation30_spill]] %s6359_s0 }
   0x2   :  { %6403 = sst [smem:[#allocation31_spill]] %s6365_s6 }
   0x3   :  { %6404 = sst [smem:[#allocation32_spill]] %s6366_s7 }
   0x4   :  { %6405 = sst [smem:[#allocation33_spill]] %s6372_s13 }
   0x5   :  { %6406 = sst [smem:[#allocation34_spill]] %s6374_s15 }
   0x6   :  { %6407 = sst [smem:[#allocation35_spill]] %s6375_s16 }
   0x7   :  { %21 = vsyncpa [#allocation4], 0 }
   0x8   :  { %23 = vsyncpa [#allocation4 + $0x1], 0 }
   0x9   :  { %24 = vsyncpa [#allocation6], 0 }
   0xa   :  { %26 = vsyncpa [#allocation6 + $0x1], 0  ;;  %s5180_s21 = smov 0   ;;  %s5182_s22 = smov 0  }
   0xb   :  { %s5184_s23 = smov 0   ;;  %s5186_s24 = smov 0  }
   0xc LB: > { %6408 = sst [smem:[#allocation9_spill]] %s5079_s23  ;;  %s5199_s25 = sadd.s32 4294967295, %s5083_s24   ;;  %s5083_s24 = sphi %s5186_s24, %s6462_s24   ;;  %s5079_s23 = sphi %s5184_s23, %s6464_s23   ;;  %s5075_s22 = sphi %s5182_s22, %s6466_s22   ;;  %s5071_s21 = sphi %s5180_s21, %s6465_s21  }
   0xd   : > { %s5202_s26 = sadd.s32 1, %s5083_s24   ;;  %s165_s28 = sadd.s32 1, %s5079_s23 }
   0xe   : > { %6409 = sst [smem:[#allocation10_spill]] %s5202_s26  ;;  %s162_s27 = ssub.s32 %s5083_s24, %s5202_s26 }
   0xf   : > { %p163_p0 = scmp.eq.s32.totalorder %s162_s27, 0  ;;  %p172_p1 = scmp.ne.s32.totalorder %s5079_s23, %s5075_s22 }
  0x10   : > { %p173_p2 = scmp.eq.s32.totalorder %s5083_s24, 0  ;;  %p178_p3 = scmp.ne.s32.totalorder %s5075_s22, %s5071_s21 }
  0x11   : > { %s5212_s29 = scalar_select %p163_p0, %s5079_s23, %s165_s28  }
  0x12   : > { %p174_p4 = por %p173_p2, %p172_p1  ;;  %p179_p5 = scmp.eq.s32.totalorder %s5199_s25, 0 }
  0x13   : > { %6410 = sst [smem:[#allocation11_spill]] %s5212_s29  ;;  %p4837_p6 = scmp.lt.s32.totalorder %s5083_s24, 4 }
  0x14   : > { %p5216_p7 = por %p179_p5, %p178_p3  ;;  %s5221_s0 = sand.u32 1, %s5079_s23  }
  0x15   : > { %s6378_s17 = sshll.u32 %s5221_s0, 8  ;;  %s6379_s18 = sshll.u32 %s5083_s24, 12 }
  0x16   : > { %s6411_s30 = scalar_select %p5216_p7, 1, 0 }
  0x17   : > { %s6412_s6 = sld [smem:[#allocation31_spill]]  ;;  %s471_s27 = scalar_lea.vmem [#allocation3], %s6378_s17 }
  0x18   : > { %s478_s28 = sshll.u32 %s471_s27, 4  ;;  %p5236_p8 = pnand %p4837_p6, %p174_p4  ;;  %s5234_s28 = int_to_ptr.vmem [resolvable:$true] %s478_s28 }
  0x1a   : > { %p4987_p11 = pneg %p5236_p8 }
  0x1d   : > { %s5230_s21 = scalar_lea.hbm %s6412_s6, %s6379_s18  ;;  %s4990_s17 = scalar_lea.hbm %s6412_s6, 16384 }
  0x1e   : > { %s4985_s19 = scalar_lea.hbm %s5230_s21, 4096  ;;  %p4991_p0 = scmp.lt.u32.totalorder %s5230_s21, %s6412_s6 }
  0x1f   : > { %p4986_p10 = scmp.ne.s32.totalorder %s5230_s21, %s4985_s19  ;;  %p4992_p1 = scmp.lt.u32.totalorder %s4990_s17, %s4985_s19 }
  0x20   : > { %p4994_p3 = scmp.lt.u32.totalorder %s4985_s19, %s5230_s21 }
  0x21   : > { %p4988_p12 = pnand %p4987_p11, %p4986_p10  ;;  %p4993_p2 = por %p4992_p1, %p4991_p0 }
  0x23   : > { %p4989_p13 = pneg %p4988_p12  ;;  %p4995_p4 = por %p4994_p3, %p4993_p2 }
  0x25   : > { %p4996_p5 = pnand %p4995_p4, %p4989_p13 }
  0x27   : > { %4999 = shalt.err (!%p4996_p5)
}
  0x28   : > { %s5000_s23 = scalar_lea.vmem %s5234_s28, 4096  ;;  %s5085_s20 = smov [#allocation3]  }
  0x29   : > { %p5001_p6 = scmp.ne.s32.totalorder %s5234_s28, %s5000_s23  ;;  %s5005_s27 = sshll.u32 %s5085_s20, 4  ;;  %s5006_s27 = int_to_ptr.vmem [resolvable:$false] %s5005_s27 }
  0x2a   : > { %s5007_s26 = scalar_lea.vmem %s5006_s27, 8192  ;;  %p5008_p9 = scmp.lt.s32.totalorder %s5234_s28, %s5006_s27 }
  0x2b   : > { %p5003_p10 = pnand %p5001_p6, %p4987_p11  ;;  %p5009_p0 = scmp.lt.s32.totalorder %s5007_s26, %s5000_s23 }
  0x2d   : > { %p5004_p12 = pneg %p5003_p10  ;;  %p5010_p1 = por %p5009_p0, %p5008_p9 }
  0x2f   : > { %p5011_p2 = pnand %p5010_p1, %p5004_p12 }
  0x31   : > { %5014 = shalt.err (!%p5011_p2)
}
  0x32   : > { %s5086_s17 = smov 64   ;;  %s5087_s18 = smov 4  }
  0x33   : > { %s6414_s23 = scalar_lea.sflag [#allocation4], %s5221_s0  ;;  %p533_p9 = scmp.lt.s32.totalorder %s5083_s24, 5 }
  0x34   : > { %4833 = dma.hbm_to_vmem [thread:$0]  (!%p5236_p8), %s5230_s21, 4096, %s5234_s28, %s6414_s23, %s5086_s17, %s5086_s17, %s5087_s18  }
  0x35   : > { %s6415_s19 = sshll.u32 %s5083_s24, 12  ;;  %s6416_s7 = sld [smem:[#allocation32_spill]] }
  0x36   : > { %p6417_p13 = scmp.ge.s32.totalorder %s5083_s24, 1  ;;  %s6419_s16 = sshll.u32 %s5221_s0, 8 }
  0x37   : > { %s492_s15 = scalar_lea.vmem [#allocation5], %s6419_s16  ;;  %s489_s21 = scalar_lea.sflag [#allocation6], %s5221_s0 }
  0x38   : > { %p5282_p3 = pnand %p6417_p13, %p533_p9  ;;  %s499_s13 = sshll.u32 %s492_s15, 4  ;;  %s5288_s13 = int_to_ptr.vmem [resolvable:$true] %s499_s13 }
  0x3b   : > { %s5278_s26 = scalar_lea.hbm %s6416_s7, %s6415_s19  ;;  %s5020_s19 = scalar_lea.hbm %s6416_s7, 16384 }
  0x3c   : > { %s5015_s28 = scalar_lea.hbm %s5278_s26, 4096  ;;  %p5021_p10 = scmp.lt.u32.totalorder %s5278_s26, %s6416_s7 }
  0x3d   : > { %p5016_p4 = scmp.ne.s32.totalorder %s5278_s26, %s5015_s28  ;;  %p5022_p12 = scmp.lt.u32.totalorder %s5020_s19, %s5015_s28 }
  0x3e   : > { %p5024_p1 = scmp.lt.u32.totalorder %s5015_s28, %s5278_s26 }
  0x3f   : > { %p5018_p5 = pnand %p5016_p4, %p4987_p11  ;;  %p5023_p0 = por %p5022_p12, %p5021_p10 }
  0x41   : > { %p5019_p6 = pneg %p5018_p5  ;;  %p5025_p2 = por %p5024_p1, %p5023_p0 }
  0x43   : > { %p5026_p9 = pnand %p5025_p2, %p5019_p6 }
  0x45   : > { %5029 = shalt.err (!%p5026_p9)
}
  0x46   : > { %s5030_s15 = scalar_lea.vmem %s5288_s13, 4096  ;;  %s5088_s16 = smov [#allocation5]  }
  0x47   : > { %p5031_p13 = scmp.ne.s32.totalorder %s5288_s13, %s5030_s15  ;;  %s5035_s24 = sshll.u32 %s5088_s16, 4  ;;  %s5036_s24 = int_to_ptr.vmem [resolvable:$false] %s5035_s24 }
  0x48   : > { %s5037_s23 = scalar_lea.vmem %s5036_s24, 8192  ;;  %p5038_p7 = scmp.lt.s32.totalorder %s5288_s13, %s5036_s24 }
  0x49   : > { %p5033_p4 = pnand %p5031_p13, %p4987_p11  ;;  %p5039_p10 = scmp.lt.s32.totalorder %s5037_s23, %s5030_s15 }
  0x4b   : > { %p5034_p5 = pneg %p5033_p4  ;;  %p5040_p12 = por %p5039_p10, %p5038_p7 }
  0x4d   : > { %p5041_p0 = pnand %p5040_p12, %p5034_p5 }
  0x4f   : > { %5044 = shalt.err (!%p5041_p0)
}
  0x50   : > { %4836 = dma.hbm_to_vmem [thread:$0]  (!%p5236_p8), %s5278_s26, 4096, %s5288_s13, %s489_s21, %s5086_s17, %s5086_s17, %s5087_s18  }
  0x51   : > { %537 = sbr.rel (%p5282_p3) target bundleno = 2337 (0x921), region = 84 }
  0x58   : > { %s539_s28 = sand.u32 1, %s5075_s22   ;;  %p6420_p7 = scmp.ne.s32.totalorder %s6411_s30, 0 }
  0x59   : > { %s3897_s19 = sshll.u32 %s539_s28, 8  ;;  %s540_s20 = scalar_lea.sflag [#allocation4], %s539_s28 }
  0x5a   : > { %s5322_s27 = scalar_lea.vmem [#allocation3], %s3897_s19 }
  0x5b   : > { %5062 = dma.done.wait (%p6420_p7), %s540_s20, 4096  }
  0x5c   : > { %5064 = vsyncadd (%p6420_p7), %s540_s20, 4294963200  ;;  %s549_s29 = scalar_lea.sflag [#allocation6], %s539_s28  ;;  %s5328_s0 = scalar_lea.vmem [#allocation5], %s3897_s19 }
  0x5d   : > { %5066 = dma.done.wait (%p6420_p7), %s549_s29, 4096  }
  0x5e   : > { %5068 = vsyncadd (%p6420_p7), %s549_s29, 4294963200  ;;  %p615_p8 = scmp.lt.s32.totalorder %s5199_s25, 3  ;;  %p3901_p11 = scmp.ne.s32.totalorder %s5199_s25, 0 }
  0x5f   : > { %v642_v0 = vld [vmem:[%s6360_s1] sm:$0xf] (!%p3901_p11)  ;;  %vm675_vm0 = vcmask (!%p3901_p11), 1043456   ;;  %vm650_vm1 = vcmask (!%p3901_p11), 31744   ;;  %vm784_vm2 = vcmask (!%p3901_p11), 523264  }
  0x60   : > { %s5336_s6 = scalar_select %p615_p8, %s5199_s25, 3 }
  0x61   : > { %633 = sbr.rel (%p3901_p11) target bundleno = 329 (0x149), region = 96  ;;  %4304 = vmatprep.subr.msk.mxu0 (!%p3901_p11), %vm675_vm0, %v642_v0  ;;  %4750 = vmatprep.subr.msk.mxu1 (!%p3901_p11), %vm675_vm0, %v642_v0  ;;  %v3902_v9 = vld [vmem:[%s6361_s2] ss:$0 sm:$0xff] (!%p3901_p11) }
  0x62   : > { %s4071_s13 = sshll.u32 %s5336_s6, 5  ;;  %s622_s26 = scalar_lea.vmem %s6368_s9, %s5336_s6  ;;  %4305 = vmatpush3.msk.msra.mxu0 (!%p3901_p11), %vm675_vm0, %v642_v0  ;;  %4751 = vmatpush3.msk.msra.mxu1 (!%p3901_p11), %vm675_vm0, %v642_v0 }
  0x63   : > { %s5346_s16 = scalar_lea.vmem %s6367_s8, %s4071_s13  ;;  %s625_s23 = scalar_lea.vmem %s6369_s10, %s5336_s6 }
  0x64   : > { %s628_s20 = scalar_lea.vmem %s6370_s11, %s5336_s6  ;;  %s6421_s13 = sld [smem:[#allocation30_spill]] (!%p3901_p11) }
  0x6a   : > { %v634_v1 = vld [vmem:[%s6421_s13] sm:$0xff]  ;;  %v635_v3 = vld [vmem:[%s6421_s13 + $0x8] sm:$0xff]  ;;  %v636_v5 = vld [vmem:[%s6421_s13 + $0x10] sm:$0xff] }
  0x6b   : > { %v638_v2 = vld [vmem:[%s6421_s13 + $0x20] sm:$0xff]  ;;  %v639_v4 = vld [vmem:[%s6421_s13 + $0x28] sm:$0xff]  ;;  %v640_v6 = vld [vmem:[%s6421_s13 + $0x30] sm:$0xff]  ;;  %4306 = vmatprep.mubr.msk.f32.mxu0 %vm650_vm1, %v634_v1 }
  0x6c   : > { %4312 = vmatprep.mubr.msk.f32.mxu1 %vm650_vm1, %v638_v2  ;;  %4307 = vmatmul.mubr.msk.f32.vlgmr.msra.gmra.mrb[0].mxu0 %vm650_vm1, %v635_v3  ;;  %v637_v7 = vld [vmem:[%s6421_s13 + $0x18] sm:$0xff] }
  0x6d   : > { %4313 = vmatmul.mubr.msk.f32.vlgmr.msra.gmra.mrb[0].mxu1 %vm650_vm1, %v639_v4  ;;  %4309 = vmatprep.mubr.msk.f32.mxu0 %vm650_vm1, %v636_v5  ;;  %v641_v8 = vld [vmem:[%s6421_s13 + $0x38] sm:$0xff] }
  0x6e   : > { %4315 = vmatprep.mubr.msk.f32.mxu1 %vm650_vm1, %v640_v6 }
  0x70   : > { %4310 = vmatmul.mubr.msk.f32.gmra.mrb[2].mxu0 %vm650_vm1, %v637_v7 }
  0x71   : > { %4316 = vmatmul.mubr.msk.f32.gmra.mrb[2].mxu1 %vm650_vm1, %v641_v8 }
 0x13f   : > { %v4308_v10 = vpop.f32.mrb[0].mxu0 }
 0x140   : > { %v4314_v11 = vpop.f32.mrb[0].mxu1  ;;  %v751_v12 = vadd.f32 %v4308_v10, %v3902_v9  ;;  %v745_v14 = vpop.f32.mrb[1].mxu0 }
 0x141   : > { %v771_v13 = vadd.f32 %v4314_v11, %v3902_v9  ;;  %v765_v15 = vpop.f32.mrb[1].mxu1  ;;  %v746_v16 = vadd.f32 %v3902_v9, %v745_v14 }
 0x142   : > { %v766_v17 = vadd.f32 %v3902_v9, %v765_v15  ;;  %786 = vst.msk [vmem:[#allocation2 + $0x8] sm:$0xff] %vm784_vm2, %v751_v12 }
 0x143   : > { %790 = vst.msk [vmem:[#allocation2 + $0x28] sm:$0xff] %vm784_vm2, %v771_v13  ;;  %785 = vst.msk [vmem:[#allocation2] sm:$0xff] %vm784_vm2, %v746_v16  ;;  %v4311_v18 = vpop.f32.mrb[2].mxu0 }
 0x144   : > { %789 = vst.msk [vmem:[#allocation2 + $0x20] sm:$0xff] %vm784_vm2, %v766_v17  ;;  %v4317_v19 = vpop.f32.mrb[2].mxu1  ;;  %v761_v20 = vadd.f32 %v4311_v18, %v3902_v9  ;;  %v755_v22 = vpop.f32.mrb[3].mxu0 }
 0x145   : > { %v781_v21 = vadd.f32 %v4317_v19, %v3902_v9  ;;  %v775_v23 = vpop.f32.mrb[3].mxu1  ;;  %v756_v24 = vadd.f32 %v3902_v9, %v755_v22 }
 0x146   : > { %v776_v25 = vadd.f32 %v3902_v9, %v775_v23  ;;  %788 = vst.msk [vmem:[#allocation2 + $0x18] sm:$0xff] %vm784_vm2, %v761_v20 }
 0x147   : > { %792 = vst.msk [vmem:[#allocation2 + $0x38] sm:$0xff] %vm784_vm2, %v781_v21  ;;  %787 = vst.msk [vmem:[#allocation2 + $0x10] sm:$0xff] %vm784_vm2, %v756_v24 }
 0x148   : > { %791 = vst.msk [vmem:[#allocation2 + $0x30] sm:$0xff] %vm784_vm2, %v776_v25 }
 0x149 PF: > { %v794_v27 = vld [vmem:[#allocation2 + $0x8] sm:$0xff]  ;;  %v5089_v29 = vmov 0.0   ;;  %vm5090_vm3 = vmmov 0   ;;  %v5416_v35 = vld [vmem:[%s5322_s27 + $0x40] sm:$0xff]   ;;  %vm812_vm4 = vcmask 523264   ;;  %v5450_v44 = vld [vmem:[%s5322_s27 + $0x10] sm:$0xff]   ;;  %v863_v50 = vlaneseq }
 0x14a   : > { %v793_v26 = vld [vmem:[#allocation2] sm:$0xff]  ;;  %4318 = vmatprep.subr.bf16.mxu0 %v5089_v29  ;;  %4326 = vmatprep.mubr.msk.bf16.mxu0 %vm5090_vm3, %v5089_v29  ;;  %v798_v34 = vld [vmem:[#allocation2 + $0x28] sm:$0xff]  ;;  %v5457_v45 = vld [vmem:[%s5322_s27 + $0x50] sm:$0xff]   ;;  %v5091_v48 = vmov 1966171168   ;;  %vm2906_vm5 = vcmask 1041409  }
 0x14b   : > { %v5404_v30 = vpack.c.bf16 %v794_v27, %v793_v26  ;;  %4354 = vmatprep.subr.bf16.mxu1 %v5089_v29  ;;  %4362 = vmatprep.mubr.msk.bf16.mxu1 %vm5090_vm3, %v5089_v29  ;;  %v797_v33 = vld [vmem:[#allocation2 + $0x20] sm:$0xff]  ;;  %v5423_v38 = vld [vmem:[%s5322_s27 + $0x48] sm:$0xff]   ;;  %v5462_v46 = vld [vmem:[%s5322_s27 + $0x18] sm:$0xff]   ;;  %v861_v49 = vunpack.c.l.s4 %v5091_v48  ;;  %v5471_v52 = vshrl.u32 %v863_v50, 7  ;;  %vm2909_vm6 = vcmask 1042434   ;;  %p4036_p3 = scmp.eq.s32.totalorder %s5199_s25, 3 }
 0x14c   : > { %v5419_v37 = vpack.c.bf16 %v798_v34, %v797_v33  ;;  %4355 = vmatpush3.bf16.msra.mxu1 %v5416_v35  ;;  %v4878_v41 = vld [vmem:[%s6362_s3] sm:$0xff]   ;;  %v5442_v43 = vld [vmem:[%s5322_s27 + $0x8] sm:$0xff]   ;;  %v5466_v47 = vld [vmem:[%s5322_s27 + $0x58] sm:$0xff]   ;;  %vm2912_vm7 = vcmask 1043459   ;;  %vm2915_vm8 = vcmask 1044484   ;;  %vm2918_vm9 = vcmask 1045509  }
 0x14d   : > { %6422 = vst [vmem:[#allocation12_spill] sm:$0xff] %v5404_v30  ;;  %v796_v31 = vld [vmem:[#allocation2 + $0x18] sm:$0xff]  ;;  %4319 = vmatpush3.bf16.msra.mxu0 %v5404_v30  ;;  %4356 = vmatprep.subr.bf16.mxu1 %v5089_v29  ;;  %v5437_v42 = vld [vmem:[%s5322_s27] sm:$0xff]   ;;  %v862_v51 = vunpack.c.0.s8 %v861_v49  ;;  %6426 = vst [vmem:[#allocation16_spill] sm:$0xff] %v5471_v52  ;;  %vm2921_vm10 = vcmask 1046534   ;;  %vm2924_vm11 = vcmask 1047559  }
 0x14e   : > { %v795_v28 = vld [vmem:[#allocation2 + $0x10] sm:$0xff]  ;;  %4320 = vmatprep.subr.bf16.mxu0 %v5089_v29  ;;  %6424 = vst [vmem:[#allocation14_spill] sm:$0xff] %v5419_v37  ;;  %v800_v39 = vld [vmem:[#allocation2 + $0x38] sm:$0xff]  ;;  %v5482_v63 = vld [vmem:[%s5322_s27 + $0x20] sm:$0xff]   ;;  %vm2927_vm12 = vcmask 64512   ;;  %vm2940_vm13 = vcmask 1043456  }
 0x14f   : > { %v5412_v32 = vpack.c.bf16 %v796_v31, %v795_v28  ;;  %v799_v36 = vld [vmem:[#allocation2 + $0x30] sm:$0xff]  ;;  %v5474_v53 = vsub.s32 %v862_v51, %v5471_v52  ;;  %v5490_v3 = vld [vmem:[%s5322_s27 + $0x80] sm:$0xff]   ;;  %v5501_v7 = vld [vmem:[%s5322_s27 + $0x28] sm:$0xff]   ;;  %vm3295_vm14 = vcmask 261120  }
 0x150   : > { %v5428_v40 = vpack.c.bf16 %v800_v39, %v799_v36  ;;  %4357 = vmatpush3.bf16.msra.mxu1 %v5423_v38  ;;  %v5514_v10 = vld [vmem:[%s5322_s27 + $0x88] sm:$0xff]   ;;  %v5519_v12 = vld [vmem:[%s5322_s27 + $0x30] sm:$0xff]   ;;  %v5536_v16 = vld [vmem:[%s5322_s27 + $0x38] sm:$0xff]  }
 0x151   : > { %6423 = vst [vmem:[#allocation13_spill] sm:$0xff] %v5412_v32  ;;  %4321 = vmatpush3.bf16.msra.mxu0 %v5412_v32  ;;  %4358 = vmatprep.subr.bf16.mxu1 %v5089_v29  ;;  %v5528_v14 = vld [vmem:[%s5322_s27 + $0x90] sm:$0xff]   ;;  %v5542_v18 = vld [vmem:[%s5322_s27 + $0x98] sm:$0xff]   ;;  %v5549_v20 = vld [vmem:[%s5322_s27 + $0x60] sm:$0xff]  }
 0x152   : > { %4322 = vmatprep.subr.bf16.mxu0 %v5089_v29  ;;  %6425 = vst [vmem:[#allocation15_spill] sm:$0xff] %v5428_v40  ;;  %v5556_v22 = vld [vmem:[%s5322_s27 + $0xc0] sm:$0xff]   ;;  %v5565_v24 = vld [vmem:[%s5322_s27 + $0x68] sm:$0xff]   ;;  %v5581_v26 = vld [vmem:[%s5322_s27 + $0x70] sm:$0xff]  }
 0x153   : > { %v5574_v25 = vld [vmem:[%s5322_s27 + $0xc8] sm:$0xff]   ;;  %v5586_v27 = vld [vmem:[%s5322_s27 + $0xd0] sm:$0xff]   ;;  %v5591_v28 = vld [vmem:[%s5322_s27 + $0x78] sm:$0xff]  }
 0x154   : > { %4359 = vmatpush3.bf16.msra.mxu1 %v5457_v45  ;;  %v5596_v33 = vld [vmem:[%s5322_s27 + $0xd8] sm:$0xff]   ;;  %v5601_v36 = vld [vmem:[%s5322_s27 + $0xa0] sm:$0xff]   ;;  %v5617_v49 = vld [vmem:[%s5322_s27 + $0xa8] sm:$0xff]  }
 0x155   : > { %4323 = vmatpush3.bf16.msra.mxu0 %v5419_v37  ;;  %4360 = vmatprep.subr.bf16.mxu1 %v5089_v29  ;;  %v5626_v50 = vld [vmem:[%s5328_s0 + $0x8] sm:$0xff]   ;;  %v5633_v51 = vld [vmem:[%s5322_s27 + $0xb0] sm:$0xff]   ;;  %v5757_v37 = vld [vmem:[%s5328_s0 + $0x98] sm:$0xff]  }
 0x156   : > { %4324 = vmatprep.subr.bf16.mxu0 %v5089_v29  ;;  %v5747_v52 = vld [vmem:[%s5328_s0 + $0x90] sm:$0xff]   ;;  %6433 = vst [vmem:[#allocation23_spill] sm:$0xff] %v5757_v37  ;;  %v5762_v32 = vld [vmem:[%s5328_s0 + $0x60] sm:$0xff]  }
 0x157   : > { %6434 = vst [vmem:[#allocation24_spill] sm:$0xff] %v5762_v32 }
 0x158   : > { %4361 = vmatpush3.bf16.msra.mxu1 %v5466_v47 }
 0x159   : > { %4325 = vmatpush3.bf16.msra.mxu0 %v5428_v40  ;;  %4378 = vmatprep.subr.bf16.mxu1 %v5089_v29  ;;  %v5752_v40 = vld [vmem:[%s5328_s0 + $0x38] sm:$0xff]  }
 0x15a   : > { %4330 = vmatprep.subr.bf16.mxu0 %v5089_v29 }
 0x15c   : > { %4327 = vmatmul.mubr.msk.bf16.vlgmr.msra.gmra.mrb[0].mxu0 %vm812_vm4, %v4878_v41  ;;  %v5608_v41 = vld [vmem:[%s5328_s0] sm:$0xff]  }
 0x15d   : > { %4331 = vmatpush3.bf16.msra.mxu0 %v5437_v42  ;;  %4338 = vmatprep.mubr.msk.bf16.mxu0 %vm5090_vm3, %v5089_v29 }
 0x15e   : > { %4332 = vmatprep.subr.bf16.mxu0 %v5089_v29 }
 0x161   : > { %4333 = vmatpush3.bf16.msra.mxu0 %v5442_v43 }
 0x162   : > { %4334 = vmatprep.subr.bf16.mxu0 %v5089_v29 }
 0x165   : > { %4335 = vmatpush3.bf16.msra.mxu0 %v5450_v44 }
 0x166   : > { %4336 = vmatprep.subr.bf16.mxu0 %v5089_v29 }
 0x169   : > { %4337 = vmatpush3.bf16.msra.mxu0 %v5462_v46 }
 0x16a   : > { %4342 = vmatprep.subr.bf16.mxu0 %v5089_v29 }
 0x22f   : > { %v850_v54 = vpop.f32.mrb[0].mxu0 }
 0x230   : > { %v866_v55 = vrot.slane %v850_v54, %v5474_v53  ;;  %v4328_v56 = vpop.f32.mrb[1].mxu0  ;;  %v859_v11 = vcombine.high %v850_v54, %v850_v54 }
 0x231   : > { %v853_v57 = vpop.f32.mrb[2].mxu0  ;;  %v5645_v56 = vld [vmem:[%s5322_s27 + $0xb8] sm:$0xff]  }
 0x232   : > { %v882_v58 = vrot.slane %v866_v55, %v5474_v53  ;;  %v908_v59 = vcombine.high %v853_v57, %v853_v57  ;;  %v4329_v60 = vpop.f32.mrb[3].mxu0  ;;  %v5479_v61 = vrot.slane %v853_v57, %v5474_v53  ;;  %v874_v13 = vcombine.high %v866_v55, %v866_v55  ;;  %v5640_v55 = vld [vmem:[%s5328_s0 + $0x10] sm:$0xff]  }
 0x233   : > { %v5531_v15 = vrot.slane %v859_v11, %v5474_v53  ;;  %v5658_v60 = vld [vmem:[%s5322_s27 + $0xe0] sm:$0xff]   ;;  %v5695_v11 = vld [vmem:[%s5328_s0 + $0x50] sm:$0xff]  }
 0x234   : > { %v904_v62 = vcombine.high %v882_v58, %v882_v58  ;;  %v5484_v0 = vpack.c.bf16 %v882_v58, %v882_v58  ;;  %v922_v1 = vrot.slane %v908_v59, %v5474_v53  ;;  %v923_v2 = vcombine.high %v5479_v61, %v5479_v61  ;;  %v5651_v58 = vld [vmem:[%s5328_s0 + $0x18] sm:$0xff]  }
 0x235   : > { %v896_v17 = vrot.slane %v874_v13, %v5474_v53  ;;  %v889_v19 = vrot.slane %v5531_v15, %v5474_v53  ;;  %v875_v54 = vcombine.high %v5531_v15, %v5531_v15  ;;  %v931_v59 = vrot.slane %v5479_v61, %v5474_v53  ;;  %v5683_v61 = vld [vmem:[%s5328_s0 + $0x48] sm:$0xff]   ;;  %v5700_v13 = vld [vmem:[%s5322_s27 + $0xf8] sm:$0xff]  }
 0x236   : > { %v5492_v4 = vpack.c.bf16 %v904_v62, %v904_v62  ;;  %v924_v5 = vcombine.high %v922_v1, %v922_v1  ;;  %v5495_v6 = vrot.slane %v922_v1, %v5474_v53  ;;  %4339 = vmatmul.mubr.msk.bf16.vlgmr.msra.gmra.mrb[4].mxu0 %vm812_vm4, %v5484_v0  ;;  %v5504_v8 = vrot.slane %v923_v2, %v5474_v53  ;;  %v5665_v1 = vld [vmem:[%s5328_s0 + $0x40] sm:$0xff]  }
 0x237   : > { %4343 = vmatpush3.bf16.msra.mxu0 %v5482_v63  ;;  %4350 = vmatprep.mubr.msk.bf16.mxu0 %vm5090_vm3, %v5089_v29  ;;  %v5551_v21 = vpack.c.bf16 %v896_v17, %v896_v17  ;;  %v5558_v23 = vpack.c.bf16 %v889_v19, %v889_v19  ;;  %v906_v31 = vcombine.high %v896_v17, %v896_v17  ;;  %v5705_v17 = vld [vmem:[%s5328_s0 + $0x58] sm:$0xff]  }
 0x238   : > { %v5507_v9 = vrot.slane %v924_v5, %v5474_v53  ;;  %4363 = vmatmul.mubr.msk.bf16.vlgmr.msra.gmra.mrb[0].mxu1 %vm812_vm4, %v5492_v4  ;;  %4344 = vmatprep.subr.bf16.mxu0 %v5089_v29  ;;  %v905_v34 = vcombine.high %v889_v19, %v889_v19  ;;  %v903_v57 = vrot.slane %v875_v54, %v5474_v53  ;;  %v5674_v53 = vld [vmem:[%s5322_s27 + $0xe8] sm:$0xff]   ;;  %v5690_v5 = vld [vmem:[%s5322_s27 + $0xf0] sm:$0xff]   ;;  %v5717_v54 = vld [vmem:[%s5328_s0 + $0x80] sm:$0xff]  }
 0x239   : > { %4379 = vmatpush3.bf16.msra.mxu1 %v5490_v3  ;;  %4386 = vmatprep.mubr.msk.bf16.mxu1 %vm5090_vm3, %v5089_v29  ;;  %6427 = vst [vmem:[#allocation17_spill] sm:$0xff] %v5551_v21  ;;  %6428 = vst [vmem:[#allocation18_spill] sm:$0xff] %v5558_v23  ;;  %v5603_v39 = vpack.c.bf16 %v906_v31, %v906_v31  ;;  %v5667_v2 = vpack.c.bf16 %v931_v59, %v931_v59  ;;  %v5710_v31 = vld [vmem:[%s5328_s0 + $0x20] sm:$0xff]  }
 0x23a   : > { %4380 = vmatprep.subr.bf16.mxu1 %v5089_v29  ;;  %v5610_v48 = vpack.c.bf16 %v905_v34, %v905_v34  ;;  %v5660_v62 = vpack.c.bf16 %v903_v57, %v903_v57  ;;  %v907_v15 = vcombine.high %v903_v57, %v903_v57  ;;  %v953_v19 = vcombine.high %v931_v59, %v931_v59  ;;  %v5726_v59 = vld [vmem:[%s5328_s0 + $0x28] sm:$0xff]  }
 0x23b   : > { %4345 = vmatpush3.bf16.msra.mxu0 %v5501_v7  ;;  %6429 = vst [vmem:[#allocation19_spill] sm:$0xff] %v5603_v39  ;;  %v5766_v30 = vpack.c.bf16 %v5504_v8, %v5504_v8 }
 0x23c   : > { %4346 = vmatprep.subr.bf16.mxu0 %v5089_v29  ;;  %6430 = vst [vmem:[#allocation20_spill] sm:$0xff] %v5610_v48  ;;  %6431 = vst [vmem:[#allocation21_spill] sm:$0xff] %v5660_v62  ;;  %v5712_v34 = vpack.c.bf16 %v907_v15, %v907_v15  ;;  %v5719_v57 = vpack.c.bf16 %v953_v19, %v953_v19  ;;  %v5735_v15 = vld [vmem:[%s5328_s0 + $0x88] sm:$0xff]   ;;  %v5742_v19 = vld [vmem:[%s5328_s0 + $0x30] sm:$0xff]  }
 0x23d   : > { %4381 = vmatpush3.bf16.msra.mxu1 %v5514_v10 }
 0x23e   : > { %4382 = vmatprep.subr.bf16.mxu1 %v5089_v29  ;;  %6432 = vst [vmem:[#allocation22_spill] sm:$0xff] %v5712_v34 }
 0x23f   : > { %4347 = vmatpush3.bf16.msra.mxu0 %v5519_v12 }
 0x240   : > { %4348 = vmatprep.subr.bf16.mxu0 %v5089_v29 }
 0x241   : > { %4383 = vmatpush3.bf16.msra.mxu1 %v5528_v14 }
 0x242   : > { %4384 = vmatprep.subr.bf16.mxu1 %v5089_v29 }
 0x243   : > { %4349 = vmatpush3.bf16.msra.mxu0 %v5536_v16 }
 0x244   : > { %4366 = vmatprep.subr.bf16.mxu0 %v5089_v29 }
 0x245   : > { %4385 = vmatpush3.bf16.msra.mxu1 %v5542_v18 }
 0x246   : > { %4351 = vmatmul.mubr.msk.bf16.vlgmr.msra.gmra.mrb[8].mxu0 %vm812_vm4, %v5551_v21  ;;  %4402 = vmatprep.subr.bf16.mxu1 %v5089_v29  ;;  %v955_v21 = vcombine.high %v5504_v8, %v5504_v8 }
 0x247   : > { %4367 = vmatpush3.bf16.msra.mxu0 %v5549_v20  ;;  %4374 = vmatprep.mubr.msk.bf16.mxu0 %vm5090_vm3, %v5089_v29 }
 0x248   : > { %4387 = vmatmul.mubr.msk.bf16.vlgmr.msra.gmra.mrb[4].mxu1 %vm812_vm4, %v5558_v23  ;;  %4368 = vmatprep.subr.bf16.mxu0 %v5089_v29  ;;  %v5798_v23 = vld [vmem:[%s5328_s0 + $0x70] sm:$0xff]  }
 0x249   : > { %4403 = vmatpush3.bf16.msra.mxu1 %v5556_v22  ;;  %4410 = vmatprep.mubr.msk.bf16.mxu1 %vm5090_vm3, %v5089_v29  ;;  %6438 = vst [vmem:[#allocation28_spill] sm:$0xff] %v5798_v23 }
 0x24a   : > { %4404 = vmatprep.subr.bf16.mxu1 %v5089_v29 }
 0x24b   : > { %4369 = vmatpush3.bf16.msra.mxu0 %v5565_v24 }
 0x24c   : > { %4370 = vmatprep.subr.bf16.mxu0 %v5089_v29 }
 0x24d   : > { %4405 = vmatpush3.bf16.msra.mxu1 %v5574_v25 }
 0x24e   : > { %4406 = vmatprep.subr.bf16.mxu1 %v5089_v29 }
 0x24f   : > { %4371 = vmatpush3.bf16.msra.mxu0 %v5581_v26 }
 0x250   : > { %4372 = vmatprep.subr.bf16.mxu0 %v5089_v29 }
 0x251   : > { %4407 = vmatpush3.bf16.msra.mxu1 %v5586_v27 }
 0x252   : > { %4408 = vmatprep.subr.bf16.mxu1 %v5089_v29 }
 0x253   : > { %4373 = vmatpush3.bf16.msra.mxu0 %v5591_v28 }
 0x254   : > { %4390 = vmatprep.subr.bf16.mxu0 %v5089_v29 }
 0x255   : > { %4409 = vmatpush3.bf16.msra.mxu1 %v5596_v33 }
 0x256   : > { %4375 = vmatmul.mubr.msk.bf16.vlgmr.msra.gmra.mrb[12].mxu0 %vm812_vm4, %v5603_v39  ;;  %4426 = vmatprep.subr.bf16.mxu1 %v5089_v29  ;;  %v5791_v39 = vld [vmem:[%s5328_s0 + $0xc8] sm:$0xff]  }
 0x257   : > { %4391 = vmatpush3.bf16.msra.mxu0 %v5601_v36  ;;  %4398 = vmatprep.mubr.msk.bf16.mxu0 %vm5090_vm3, %v5089_v29  ;;  %6437 = vst [vmem:[#allocation27_spill] sm:$0xff] %v5791_v39 }
 0x258   : > { %4411 = vmatmul.mubr.msk.bf16.vlgmr.msra.gmra.mrb[8].mxu1 %vm812_vm4, %v5610_v48  ;;  %4392 = vmatprep.subr.bf16.mxu0 %v5089_v29  ;;  %v5782_v48 = vld [vmem:[%s5328_s0 + $0x68] sm:$0xff]  }
 0x259   : > { %4427 = vmatpush3.bf16.msra.mxu1 %v5608_v41  ;;  %4434 = vmatprep.mubr.msk.bf16.mxu1 %vm5090_vm3, %v5089_v29  ;;  %6436 = vst [vmem:[#allocation26_spill] sm:$0xff] %v5782_v48 }
 0x25a   : > { %4428 = vmatprep.subr.bf16.mxu1 %v5089_v29 }
 0x25b   : > { %4393 = vmatpush3.bf16.msra.mxu0 %v5617_v49 }
 0x25c   : > { %4394 = vmatprep.subr.bf16.mxu0 %v5089_v29 }
 0x25d   : > { %4429 = vmatpush3.bf16.msra.mxu1 %v5626_v50 }
 0x25e   : > { %4430 = vmatprep.subr.bf16.mxu1 %v5089_v29 }
 0x25f   : > { %4395 = vmatpush3.bf16.msra.mxu0 %v5633_v51 }
 0x260   : > { %4396 = vmatprep.subr.bf16.mxu0 %v5089_v29 }
 0x261   : > { %4431 = vmatpush3.bf16.msra.mxu1 %v5640_v55 }
 0x262   : > { %4432 = vmatprep.subr.bf16.mxu1 %v5089_v29 }
 0x263   : > { %4397 = vmatpush3.bf16.msra.mxu0 %v5645_v56 }
 0x264   : > { %4414 = vmatprep.subr.bf16.mxu0 %v5089_v29 }
 0x265   : > { %4433 = vmatpush3.bf16.msra.mxu1 %v5651_v58 }
 0x266   : > { %4399 = vmatmul.mubr.msk.bf16.vlgmr.msra.gmra.mrb[16].mxu0 %vm812_vm4, %v5660_v62  ;;  %4450 = vmatprep.subr.bf16.mxu1 %v5089_v29  ;;  %v5775_v62 = vpack.c.bf16 %v5495_v6, %v5495_v6 }
 0x267   : > { %4415 = vmatpush3.bf16.msra.mxu0 %v5658_v60  ;;  %4422 = vmatprep.mubr.msk.bf16.mxu0 %vm5090_vm3, %v5089_v29 }
 0x268   : > { %4435 = vmatmul.mubr.msk.bf16.vlgmr.msra.gmra.mrb[12].mxu1 %vm812_vm4, %v5667_v2  ;;  %4416 = vmatprep.subr.bf16.mxu0 %v5089_v29 }
 0x269   : > { %4451 = vmatpush3.bf16.msra.mxu1 %v5665_v1  ;;  %4458 = vmatprep.mubr.msk.bf16.mxu1 %vm5090_vm3, %v5089_v29 }
 0x26a   : > { %4452 = vmatprep.subr.bf16.mxu1 %v5089_v29 }
 0x26b   : > { %4417 = vmatpush3.bf16.msra.mxu0 %v5674_v53 }
 0x26c   : > { %4418 = vmatprep.subr.bf16.mxu0 %v5089_v29 }
 0x26d   : > { %4453 = vmatpush3.bf16.msra.mxu1 %v5683_v61 }
 0x26e   : > { %4454 = vmatprep.subr.bf16.mxu1 %v5089_v29 }
 0x26f   : > { %4419 = vmatpush3.bf16.msra.mxu0 %v5690_v5 }
 0x270   : > { %4420 = vmatprep.subr.bf16.mxu0 %v5089_v29 }
 0x271   : > { %4455 = vmatpush3.bf16.msra.mxu1 %v5695_v11 }
 0x272   : > { %4456 = vmatprep.subr.bf16.mxu1 %v5089_v29 }
 0x273   : > { %4421 = vmatpush3.bf16.msra.mxu0 %v5700_v13 }
 0x274   : > { %4438 = vmatprep.subr.bf16.mxu0 %v5089_v29 }
 0x275   : > { %4457 = vmatpush3.bf16.msra.mxu1 %v5705_v17 }
 0x276   : > { %4423 = vmatmul.mubr.msk.bf16.vlgmr.msra.gmra.mrb[20].mxu0 %vm812_vm4, %v5712_v34  ;;  %4474 = vmatprep.subr.bf16.mxu1 %v5089_v29  ;;  %v5771_v34 = vld [vmem:[%s5328_s0 + $0xc0] sm:$0xff]  }
 0x277   : > { %4439 = vmatpush3.bf16.msra.mxu0 %v5710_v31  ;;  %4446 = vmatprep.mubr.msk.bf16.mxu0 %vm5090_vm3, %v5089_v29  ;;  %6435 = vst [vmem:[#allocation25_spill] sm:$0xff] %v5771_v34 }
 0x278   : > { %4459 = vmatmul.mubr.msk.bf16.vlgmr.msra.gmra.mrb[16].mxu1 %vm812_vm4, %v5719_v57  ;;  %4440 = vmatprep.subr.bf16.mxu0 %v5089_v29 }
 0x279   : > { %4475 = vmatpush3.bf16.msra.mxu1 %v5717_v54  ;;  %4482 = vmatprep.mubr.msk.bf16.mxu1 %vm5090_vm3, %v5089_v29 }
 0x27a   : > { %4476 = vmatprep.subr.bf16.mxu1 %v5089_v29 }
 0x27b   : > { %4441 = vmatpush3.bf16.msra.mxu0 %v5726_v59 }
 0x27c   : > { %4442 = vmatprep.subr.bf16.mxu0 %v5089_v29 }
 0x27d   : > { %4477 = vmatpush3.bf16.msra.mxu1 %v5735_v15 }
 0x27e   : > { %4478 = vmatprep.subr.bf16.mxu1 %v5089_v29 }
 0x27f   : > { %4443 = vmatpush3.bf16.msra.mxu0 %v5742_v19 }
 0x280   : > { %4444 = vmatprep.subr.bf16.mxu0 %v5089_v29 }
 0x281   : > { %4479 = vmatpush3.bf16.msra.mxu1 %v5747_v52 }
 0x282   : > { %4480 = vmatprep.subr.bf16.mxu1 %v5089_v29 }
 0x283   : > { %4445 = vmatpush3.bf16.msra.mxu0 %v5752_v40 }
 0x284   : > { %4462 = vmatprep.subr.bf16.mxu0 %v5089_v29 }
 0x285   : > { %4481 = vmatpush3.bf16.msra.mxu1 %v5757_v37  ;;  %v5824_v37 = vpack.c.bf16 %v955_v21, %v955_v21  ;;  %v5848_v21 = vld [vmem:[%s5328_s0 + $0xb0] sm:$0xff]  }
 0x286   : > { %4447 = vmatmul.mubr.msk.bf16.vlgmr.msra.gmra.mrb[24].mxu0 %vm812_vm4, %v5766_v30  ;;  %4498 = vmatprep.subr.bf16.mxu1 %v5089_v29 }
 0x287   : > { %4463 = vmatpush3.bf16.msra.mxu0 %v5762_v32  ;;  %4470 = vmatprep.mubr.msk.bf16.mxu0 %vm5090_vm3, %v5089_v29  ;;  %v5803_v32 = vld [vmem:[%s5328_s0 + $0xd0] sm:$0xff]  }
 0x288   : > { %4483 = vmatmul.mubr.msk.bf16.vlgmr.msra.gmra.mrb[20].mxu1 %vm812_vm4, %v5775_v62  ;;  %4464 = vmatprep.subr.bf16.mxu0 %v5089_v29 }
 0x289   : > { %4499 = vmatpush3.bf16.msra.mxu1 %v5771_v34  ;;  %4506 = vmatprep.mubr.msk.bf16.mxu1 %vm5090_vm3, %v5089_v29  ;;  %v5808_v34 = vld [vmem:[%s5328_s0 + $0x78] sm:$0xff]  }
 0x28a   : > { %4500 = vmatprep.subr.bf16.mxu1 %v5089_v29 }
 0x28b   : > { %4465 = vmatpush3.bf16.msra.mxu0 %v5782_v48  ;;  %v5815_v48 = vld [vmem:[%s5328_s0 + $0xd8] sm:$0xff]  }
 0x28c   : > { %4466 = vmatprep.subr.bf16.mxu0 %v5089_v29 }
 0x28d   : > { %4501 = vmatpush3.bf16.msra.mxu1 %v5791_v39  ;;  %v954_v39 = vcombine.high %v5495_v6, %v5495_v6  ;;  %v5835_v6 = vld [vmem:[%s5328_s0 + $0xa8] sm:$0xff]  }
 0x28e   : > { %4502 = vmatprep.subr.bf16.mxu1 %v5089_v29 }
 0x28f   : > { %4467 = vmatpush3.bf16.msra.mxu0 %v5798_v23  ;;  %v5822_v23 = vld [vmem:[%s5328_s0 + $0xa0] sm:$0xff]   ;;  %v5828_v8 = vpack.c.bf16 %v954_v39, %v954_v39  ;;  %v5855_v39 = vld [vmem:[%s5328_s0 + $0xb8] sm:$0xff]  }
 0x290   : > { %4468 = vmatprep.subr.bf16.mxu0 %v5089_v29 }
 0x291   : > { %4503 = vmatpush3.bf16.msra.mxu1 %v5803_v32 }
 0x292   : > { %4504 = vmatprep.subr.bf16.mxu1 %v5089_v29 }
 0x293   : > { %4469 = vmatpush3.bf16.msra.mxu0 %v5808_v34 }
 0x294   : > { %4486 = vmatprep.subr.bf16.mxu0 %v5089_v29 }
 0x295   : > { %4505 = vmatpush3.bf16.msra.mxu1 %v5815_v48 }
 0x296   : > { %4471 = vmatmul.mubr.msk.bf16.vlgmr.msra.gmra.mrb[28].mxu0 %vm812_vm4, %v5824_v37  ;;  %4522 = vmatprep.subr.bf16.mxu1 %v5089_v29 }
 0x297   : > { %4487 = vmatpush3.bf16.msra.mxu0 %v5822_v23  ;;  %4494 = vmatprep.mubr.msk.bf16.mxu0 %vm5090_vm3, %v5089_v29 }
 0x298   : > { %4507 = vmatmul.mubr.msk.bf16.vlgmr.msra.gmra.mrb[24].mxu1 %vm812_vm4, %v5828_v8  ;;  %4488 = vmatprep.subr.bf16.mxu0 %v5089_v29 }
 0x299   : > { %4523 = vmatpush3.bf16.msra.mxu1 %v5437_v42  ;;  %4530 = vmatprep.mubr.msk.bf16.mxu1 %vm5090_vm3, %v5089_v29  ;;  %v5862_v42 = vld [vmem:[%s5328_s0 + $0xe0] sm:$0xff]  }
 0x29a   : > { %4524 = vmatprep.subr.bf16.mxu1 %v5089_v29 }
 0x29b   : > { %4489 = vmatpush3.bf16.msra.mxu0 %v5835_v6 }
 0x29c   : > { %4490 = vmatprep.subr.bf16.mxu0 %v5089_v29 }
 0x29d   : > { %4525 = vmatpush3.bf16.msra.mxu1 %v5442_v43  ;;  %v5866_v43 = vpack.c.bf16 %v5507_v9, %v5507_v9 }
 0x29e   : > { %4526 = vmatprep.subr.bf16.mxu1 %v5089_v29 }
 0x29f   : > { %4491 = vmatpush3.bf16.msra.mxu0 %v5848_v21 }
 0x2a0   : > { %4492 = vmatprep.subr.bf16.mxu0 %v5089_v29 }
 0x2a1   : > { %4527 = vmatpush3.bf16.msra.mxu1 %v5450_v44  ;;  %v5875_v44 = vld [vmem:[%s5328_s0 + $0xe8] sm:$0xff]  }
 0x2a2   : > { %4528 = vmatprep.subr.bf16.mxu1 %v5089_v29  ;;  %6439 = vst [vmem:[#allocation29_spill] sm:$0xff] %v5875_v44 }
 0x2a3   : > { %4493 = vmatpush3.bf16.msra.mxu0 %v5855_v39 }
 0x2a4   : > { %4510 = vmatprep.subr.bf16.mxu0 %v5089_v29 }
 0x2a5   : > { %4529 = vmatpush3.bf16.msra.mxu1 %v5462_v46  ;;  %v5888_v46 = vld [vmem:[%s5328_s0 + $0xf0] sm:$0xff]  }
 0x2a6   : > { %4495 = vmatmul.mubr.msk.bf16.vlgmr.msra.gmra.mrb[32].mxu0 %vm812_vm4, %v5866_v43  ;;  %4546 = vmatprep.subr.bf16.mxu1 %v5089_v29 }
 0x2a7   : > { %4511 = vmatpush3.bf16.msra.mxu0 %v5862_v42  ;;  %4518 = vmatprep.mubr.msk.bf16.mxu0 %vm5090_vm3, %v5089_v29 }
 0x2a8   : > { %4531 = vmatmul.mubr.msk.bf16.vlgmr.msra.gmra.mrb[28].mxu1 %vm812_vm4, %v5667_v2  ;;  %4512 = vmatprep.subr.bf16.mxu0 %v5089_v29  ;;  %v5895_v2 = vld [vmem:[%s5328_s0 + $0xf8] sm:$0xff]  }
 0x2a9   : > { %4547 = vmatpush3.bf16.msra.mxu1 %v5416_v35  ;;  %4554 = vmatprep.mubr.msk.bf16.mxu1 %vm5090_vm3, %v5089_v29  ;;  %v956_v35 = vcombine.high %v5507_v9, %v5507_v9  ;;  %v6446_v9 = vld [vmem:[#allocation27_spill] sm:$0xff] }
 0x2aa   : > { %4548 = vmatprep.subr.bf16.mxu1 %v5089_v29 }
 0x2ab   : > { %4513 = vmatpush3.bf16.msra.mxu0 %v5875_v44  ;;  %v5903_v44 = vpack.c.bf16 %v956_v35, %v956_v35 }
 0x2ac   : > { %4514 = vmatprep.subr.bf16.mxu0 %v5089_v29 }
 0x2ad   : > { %4549 = vmatpush3.bf16.msra.mxu1 %v5423_v38  ;;  %v6442_v38 = vld [vmem:[#allocation24_spill] sm:$0xff] }
 0x2ae   : > { %4550 = vmatprep.subr.bf16.mxu1 %v5089_v29 }
 0x2af   : > { %4515 = vmatpush3.bf16.msra.mxu0 %v5888_v46 }
 0x2b0   : > { %4516 = vmatprep.subr.bf16.mxu0 %v5089_v29 }
 0x2b1   : > { %4551 = vmatpush3.bf16.msra.mxu1 %v5457_v45  ;;  %v6443_v45 = vld [vmem:[#allocation18_spill] sm:$0xff] }
 0x2b2   : > { %4552 = vmatprep.subr.bf16.mxu1 %v5089_v29 }
 0x2b3   : > { %4517 = vmatpush3.bf16.msra.mxu0 %v5895_v2 }
 0x2b4   : > { %4534 = vmatprep.subr.bf16.mxu0 %v5089_v29 }
 0x2b5   : > { %4553 = vmatpush3.bf16.msra.mxu1 %v5466_v47 }
 0x2b6   : > { %4519 = vmatmul.mubr.msk.bf16.vlgmr.msra.gmra.mrb[36].mxu0 %vm812_vm4, %v5903_v44  ;;  %4570 = vmatprep.subr.bf16.mxu1 %v5089_v29 }
 0x2b7   : > { %4535 = vmatpush3.bf16.msra.mxu0 %v5482_v63  ;;  %4542 = vmatprep.mubr.msk.bf16.mxu0 %vm5090_vm3, %v5089_v29  ;;  %v6445_v63 = vld [vmem:[#allocation26_spill] sm:$0xff] }
 0x2b8   : > { %4555 = vmatmul.mubr.msk.bf16.vlgmr.msra.gmra.mrb[32].mxu1 %vm812_vm4, %v5719_v57  ;;  %4536 = vmatprep.subr.bf16.mxu0 %v5089_v29 }
 0x2b9   : > { %4571 = vmatpush3.bf16.msra.mxu1 %v5490_v3  ;;  %4578 = vmatprep.mubr.msk.bf16.mxu1 %vm5090_vm3, %v5089_v29 }
 0x2ba   : > { %4572 = vmatprep.subr.bf16.mxu1 %v5089_v29 }
 0x2bb   : > { %4537 = vmatpush3.bf16.msra.mxu0 %v5501_v7 }
 0x2bc   : > { %4538 = vmatprep.subr.bf16.mxu0 %v5089_v29 }
 0x2bd   : > { %4573 = vmatpush3.bf16.msra.mxu1 %v5514_v10 }
 0x2be   : > { %4574 = vmatprep.subr.bf16.mxu1 %v5089_v29 }
 0x2bf   : > { %4539 = vmatpush3.bf16.msra.mxu0 %v5519_v12 }
 0x2c0   : > { %4540 = vmatprep.subr.bf16.mxu0 %v5089_v29 }
 0x2c1   : > { %4575 = vmatpush3.bf16.msra.mxu1 %v5528_v14  ;;  %v6447_v14 = vld [vmem:[#allocation28_spill] sm:$0xff] }
 0x2c2   : > { %4576 = vmatprep.subr.bf16.mxu1 %v5089_v29 }
 0x2c3   : > { %4541 = vmatpush3.bf16.msra.mxu0 %v5536_v16  ;;  %v6448_v16 = vld [vmem:[#allocation19_spill] sm:$0xff] }
 0x2c4   : > { %4558 = vmatprep.subr.bf16.mxu0 %v5089_v29 }
 0x2c5   : > { %4577 = vmatpush3.bf16.msra.mxu1 %v5542_v18  ;;  %v6449_v18 = vld [vmem:[#allocation20_spill] sm:$0xff] }
 0x2c6   : > { %4543 = vmatmul.mubr.msk.bf16.vlgmr.msra.gmra.mrb[40].mxu0 %vm812_vm4, %v5766_v30  ;;  %4594 = vmatprep.subr.bf16.mxu1 %v5089_v29  ;;  %v6440_v30 = vld [vmem:[#allocation23_spill] sm:$0xff] }
 0x2c7   : > { %4559 = vmatpush3.bf16.msra.mxu0 %v5549_v20  ;;  %4566 = vmatprep.mubr.msk.bf16.mxu0 %vm5090_vm3, %v5089_v29 }
 0x2c8   : > { %4579 = vmatmul.mubr.msk.bf16.vlgmr.msra.gmra.mrb[36].mxu1 %vm812_vm4, %v5775_v62  ;;  %4560 = vmatprep.subr.bf16.mxu0 %v5089_v29 }
 0x2c9   : > { %4595 = vmatpush3.bf16.msra.mxu1 %v5556_v22  ;;  %4602 = vmatprep.mubr.msk.bf16.mxu1 %vm5090_vm3, %v5089_v29 }
 0x2ca   : > { %4596 = vmatprep.subr.bf16.mxu1 %v5089_v29 }
 0x2cb   : > { %4561 = vmatpush3.bf16.msra.mxu0 %v5565_v24 }
 0x2cc   : > { %4562 = vmatprep.subr.bf16.mxu0 %v5089_v29 }
 0x2cd   : > { %4597 = vmatpush3.bf16.msra.mxu1 %v5574_v25 }
 0x2ce   : > { %4598 = vmatprep.subr.bf16.mxu1 %v5089_v29 }
 0x2cf   : > { %4563 = vmatpush3.bf16.msra.mxu0 %v5581_v26 }
 0x2d0   : > { %4564 = vmatprep.subr.bf16.mxu0 %v5089_v29 }
 0x2d1   : > { %4599 = vmatpush3.bf16.msra.mxu1 %v5586_v27 }
 0x2d2   : > { %4600 = vmatprep.subr.bf16.mxu1 %v5089_v29 }
 0x2d3   : > { %4565 = vmatpush3.bf16.msra.mxu0 %v5591_v28  ;;  %v6450_v28 = vld [vmem:[#allocation21_spill] sm:$0xff] }
 0x2d4   : > { %4582 = vmatprep.subr.bf16.mxu0 %v5089_v29 }
 0x2d5   : > { %4601 = vmatpush3.bf16.msra.mxu1 %v5596_v33 }
 0x2d6   : > { %4567 = vmatmul.mubr.msk.bf16.vlgmr.msra.gmra.mrb[44].mxu0 %vm812_vm4, %v5824_v37  ;;  %4618 = vmatprep.subr.bf16.mxu1 %v5089_v29  ;;  %v6441_v37 = vld [vmem:[#allocation17_spill] sm:$0xff] }
 0x2d7   : > { %4583 = vmatpush3.bf16.msra.mxu0 %v5601_v36  ;;  %4590 = vmatprep.mubr.msk.bf16.mxu0 %vm5090_vm3, %v5089_v29 }
 0x2d8   : > { %4603 = vmatmul.mubr.msk.bf16.vlgmr.msra.gmra.mrb[40].mxu1 %vm812_vm4, %v5828_v8  ;;  %4584 = vmatprep.subr.bf16.mxu0 %v5089_v29 }
 0x2d9   : > { %4619 = vmatpush3.bf16.msra.mxu1 %v5608_v41  ;;  %4626 = vmatprep.mubr.msk.bf16.mxu1 %vm5090_vm3, %v5089_v29 }
 0x2da   : > { %4620 = vmatprep.subr.bf16.mxu1 %v5089_v29 }
 0x2db   : > { %4585 = vmatpush3.bf16.msra.mxu0 %v5617_v49  ;;  %v6451_v49 = vld [vmem:[#allocation29_spill] sm:$0xff] }
 0x2dc   : > { %4586 = vmatprep.subr.bf16.mxu0 %v5089_v29 }
 0x2dd   : > { %4621 = vmatpush3.bf16.msra.mxu1 %v5626_v50 }
 0x2de   : > { %4622 = vmatprep.subr.bf16.mxu1 %v5089_v29 }
 0x2df   : > { %4587 = vmatpush3.bf16.msra.mxu0 %v5633_v51 }
 0x2e0   : > { %4588 = vmatprep.subr.bf16.mxu0 %v5089_v29 }
 0x2e1   : > { %4623 = vmatpush3.bf16.msra.mxu1 %v5640_v55 }
 0x2e2   : > { %4624 = vmatprep.subr.bf16.mxu1 %v5089_v29 }
 0x2e3   : > { %4589 = vmatpush3.bf16.msra.mxu0 %v5645_v56 }
 0x2e4   : > { %4606 = vmatprep.subr.bf16.mxu0 %v5089_v29 }
 0x2e5   : > { %4625 = vmatpush3.bf16.msra.mxu1 %v5651_v58  ;;  %v6452_v58 = vld [vmem:[#allocation22_spill] sm:$0xff] }
 0x2e6   : > { %4591 = vmatmul.mubr.msk.bf16.vlgmr.msra.gmra.mrb[48].mxu0 %vm812_vm4, %v5866_v43  ;;  %4642 = vmatprep.subr.bf16.mxu1 %v5089_v29 }
 0x2e7   : > { %4607 = vmatpush3.bf16.msra.mxu0 %v5658_v60  ;;  %4614 = vmatprep.mubr.msk.bf16.mxu0 %vm5090_vm3, %v5089_v29 }
 0x2e8   : > { %4627 = vmatmul.mubr.msk.bf16.vlgmr.msra.gmra.mrb[28].mxu1 %vm812_vm4, %v5484_v0  ;;  %4608 = vmatprep.subr.bf16.mxu0 %v5089_v29 }
 0x2e9   : > { %4643 = vmatpush3.bf16.msra.mxu1 %v5665_v1  ;;  %4650 = vmatprep.mubr.msk.bf16.mxu1 %vm5090_vm3, %v5089_v29 }
 0x2ea   : > { %4644 = vmatprep.subr.bf16.mxu1 %v5089_v29 }
 0x2eb   : > { %4609 = vmatpush3.bf16.msra.mxu0 %v5674_v53 }
 0x2ec   : > { %4610 = vmatprep.subr.bf16.mxu0 %v5089_v29 }
 0x2ed   : > { %4645 = vmatpush3.bf16.msra.mxu1 %v5683_v61 }
 0x2ee   : > { %4646 = vmatprep.subr.bf16.mxu1 %v5089_v29 }
 0x2ef   : > { %4611 = vmatpush3.bf16.msra.mxu0 %v5690_v5 }
 0x2f0   : > { %4612 = vmatprep.subr.bf16.mxu0 %v5089_v29 }
 0x2f1   : > { %4647 = vmatpush3.bf16.msra.mxu1 %v5695_v11 }
 0x2f2   : > { %4648 = vmatprep.subr.bf16.mxu1 %v5089_v29 }
 0x2f3   : > { %4613 = vmatpush3.bf16.msra.mxu0 %v5700_v13 }
 0x2f4   : > { %4630 = vmatprep.subr.bf16.mxu0 %v5089_v29 }
 0x2f5   : > { %4649 = vmatpush3.bf16.msra.mxu1 %v5705_v17 }
 0x2f6   : > { %4615 = vmatmul.mubr.msk.bf16.vlgmr.msra.gmra.mrb[52].mxu0 %vm812_vm4, %v5903_v44  ;;  %4666 = vmatprep.subr.bf16.mxu1 %v5089_v29 }
 0x2f7   : > { %4631 = vmatpush3.bf16.msra.mxu0 %v5710_v31  ;;  %4638 = vmatprep.mubr.msk.bf16.mxu0 %vm5090_vm3, %v5089_v29 }
 0x2f8   : > { %4651 = vmatmul.mubr.msk.bf16.vlgmr.msra.gmra.mrb[32].mxu1 %vm812_vm4, %v5492_v4  ;;  %4632 = vmatprep.subr.bf16.mxu0 %v5089_v29 }
 0x2f9   : > { %4667 = vmatpush3.bf16.msra.mxu1 %v5717_v54  ;;  %4674 = vmatprep.mubr.msk.bf16.mxu1 %vm5090_vm3, %v5089_v29 }
 0x2fa   : > { %4668 = vmatprep.subr.bf16.mxu1 %v5089_v29 }
 0x2fb   : > { %4633 = vmatpush3.bf16.msra.mxu0 %v5726_v59 }
 0x2fc   : > { %4634 = vmatprep.subr.bf16.mxu0 %v5089_v29 }
 0x2fd   : > { %4669 = vmatpush3.bf16.msra.mxu1 %v5735_v15 }
 0x2fe   : > { %4670 = vmatprep.subr.bf16.mxu1 %v5089_v29 }
 0x2ff   : > { %4635 = vmatpush3.bf16.msra.mxu0 %v5742_v19 }
 0x300   : > { %4636 = vmatprep.subr.bf16.mxu0 %v5089_v29 }
 0x301   : > { %4671 = vmatpush3.bf16.msra.mxu1 %v5747_v52 }
 0x302   : > { %4672 = vmatprep.subr.bf16.mxu1 %v5089_v29 }
 0x303   : > { %4637 = vmatpush3.bf16.msra.mxu0 %v5752_v40  ;;  %v6444_v40 = vld [vmem:[#allocation25_spill] sm:$0xff] }
 0x304   : > { %4654 = vmatprep.subr.bf16.mxu0 %v5089_v29 }
 0x305   : > { %4673 = vmatpush3.bf16.msra.mxu1 %v6440_v30 }
 0x306   : > { %4639 = vmatmul.mubr.msk.bf16.vlgmr.msra.gmra.mrb[40].mxu0 %vm812_vm4, %v6441_v37  ;;  %4690 = vmatprep.subr.bf16.mxu1 %v5089_v29 }
 0x307   : > { %4655 = vmatpush3.bf16.msra.mxu0 %v6442_v38  ;;  %4662 = vmatprep.mubr.msk.bf16.mxu0 %vm5090_vm3, %v5089_v29 }
 0x308   : > { %4675 = vmatmul.mubr.msk.bf16.vlgmr.msra.gmra.mrb[36].mxu1 %vm812_vm4, %v6443_v45  ;;  %4656 = vmatprep.subr.bf16.mxu0 %v5089_v29 }
 0x309   : > { %4691 = vmatpush3.bf16.msra.mxu1 %v6444_v40  ;;  %v1178_v47 = vpop.f32.mrb[4].mxu0  ;;  %4698 = vmatprep.mubr.msk.bf16.mxu1 %vm5090_vm3, %v5089_v29 }
 0x30a   : > { %v4340_v52 = vpop.f32.mrb[5].mxu0  ;;  %4692 = vmatprep.subr.bf16.mxu1 %v5089_v29 }
 0x30b   : > { %4657 = vmatpush3.bf16.msra.mxu0 %v6445_v63  ;;  %v1181_v0 = vpop.f32.mrb[6].mxu0  ;;  %v6041_v3 = vpop.f32.mrb[0].mxu1 }
 0x30c   : > { %v4341_v4 = vpop.f32.mrb[7].mxu0  ;;  %v4364_v7 = vpop.f32.mrb[1].mxu1  ;;  %4658 = vmatprep.subr.bf16.mxu0 %v5089_v29 }
 0x30d   : > { %4693 = vmatpush3.bf16.msra.mxu1 %v6446_v9  ;;  %v1315_v10 = vpop.f32.mrb[2].mxu1 }
 0x30e   : > { %v4365_v12 = vpop.f32.mrb[3].mxu1  ;;  %4694 = vmatprep.subr.bf16.mxu1 %v5089_v29 }
 0x30f   : > { %4659 = vmatpush3.bf16.msra.mxu0 %v6447_v14 }
 0x310   : > { %4660 = vmatprep.subr.bf16.mxu0 %v5089_v29 }
 0x311   : > { %4695 = vmatpush3.bf16.msra.mxu1 %v5803_v32 }
 0x312   : > { %4696 = vmatprep.subr.bf16.mxu1 %v5089_v29 }
 0x313   : > { %4661 = vmatpush3.bf16.msra.mxu0 %v5808_v34 }
 0x314   : > { %4678 = vmatprep.subr.bf16.mxu0 %v5089_v29 }
 0x315   : > { %4697 = vmatpush3.bf16.msra.mxu1 %v5815_v48 }
 0x316   : > { %4663 = vmatmul.mubr.msk.bf16.vlgmr.msra.gmra.mrb[44].mxu0 %vm812_vm4, %v6448_v16 }
 0x317   : > { %4679 = vmatpush3.bf16.msra.mxu0 %v5822_v23  ;;  %4686 = vmatprep.mubr.msk.bf16.mxu0 %vm5090_vm3, %v5089_v29 }
 0x318   : > { %4699 = vmatmul.mubr.msk.bf16.vlgmr.msra.gmra.mrb[40].mxu1 %vm812_vm4, %v6449_v18  ;;  %4680 = vmatprep.subr.bf16.mxu0 %v5089_v29 }
 0x319   : > { %v1245_v32 = vpop.f32.mrb[8].mxu0 }
 0x31a   : > { %v4352_v20 = vpop.f32.mrb[9].mxu0 }
 0x31b   : > { %v1248_v22 = vpop.f32.mrb[10].mxu0  ;;  %v1446_v24 = vpop.f32.mrb[4].mxu1  ;;  %4681 = vmatpush3.bf16.msra.mxu0 %v5835_v6 }
 0x31c   : > { %v4353_v25 = vpop.f32.mrb[11].mxu0  ;;  %v4388_v26 = vpop.f32.mrb[5].mxu1  ;;  %4682 = vmatprep.subr.bf16.mxu0 %v5089_v29 }
 0x31d   : > { %v1449_v27 = vpop.f32.mrb[6].mxu1 }
 0x31e   : > { %v4389_v23 = vpop.f32.mrb[7].mxu1 }
 0x31f   : > { %4683 = vmatpush3.bf16.msra.mxu0 %v5848_v21 }
 0x320   : > { %4684 = vmatprep.subr.bf16.mxu0 %v5089_v29 }
 0x323   : > { %4685 = vmatpush3.bf16.msra.mxu0 %v5855_v39 }
 0x324   : > { %4702 = vmatprep.subr.bf16.mxu0 %v5089_v29 }
 0x326   : > { %4687 = vmatmul.mubr.msk.bf16.vlgmr.msra.gmra.mrb[48].mxu0 %vm812_vm4, %v6450_v28 }
 0x327   : > { %4703 = vmatpush3.bf16.msra.mxu0 %v5862_v42  ;;  %4710 = vmatprep.mubr.msk.bf16.mxu0 %vm5090_vm3, %v5089_v29 }
 0x328   : > { %4704 = vmatprep.subr.bf16.mxu0 %v5089_v29 }
 0x329   : > { %v1379_v33 = vpop.f32.mrb[12].mxu0 }
 0x32a   : > { %v4376_v36 = vpop.f32.mrb[13].mxu0 }
 0x32b   : > { %v1382_v41 = vpop.f32.mrb[14].mxu0  ;;  %v1580_v48 = vpop.f32.mrb[8].mxu1  ;;  %4705 = vmatpush3.bf16.msra.mxu0 %v6451_v49 }
 0x32c   : > { %v4377_v50 = vpop.f32.mrb[15].mxu0  ;;  %v4412_v51 = vpop.f32.mrb[9].mxu1  ;;  %4706 = vmatprep.subr.bf16.mxu0 %v5089_v29 }
 0x32d   : > { %v1583_v55 = vpop.f32.mrb[10].mxu1 }
 0x32e   : > { %v4413_v56 = vpop.f32.mrb[11].mxu1 }
 0x32f   : > { %4707 = vmatpush3.bf16.msra.mxu0 %v5888_v46 }
 0x330   : > { %4708 = vmatprep.subr.bf16.mxu0 %v5089_v29 }
 0x333   : > { %4709 = vmatpush3.bf16.msra.mxu0 %v5895_v2 }
 0x336   : > { %4711 = vmatmul.mubr.msk.bf16.vlgmr.msra.gmra.mrb[52].mxu0 %vm812_vm4, %v6452_v58 }
 0x339   : > { %v1513_v60 = vpop.f32.mrb[16].mxu0 }
 0x33a   : > { %v4400_v62 = vpop.f32.mrb[17].mxu0 }
 0x33b   : > { %v1516_v1 = vpop.f32.mrb[18].mxu0  ;;  %v1714_v53 = vpop.f32.mrb[12].mxu1 }
 0x33c   : > { %v2509_v61 = vsub.f32 %v1178_v47, %v1714_v53  ;;  %v4401_v5 = vpop.f32.mrb[19].mxu0  ;;  %v4436_v11 = vpop.f32.mrb[13].mxu1 }
 0x33d   : > { %v1717_v13 = vpop.f32.mrb[14].mxu1 }
 0x33e   : > { %v4437_v17 = vpop.f32.mrb[15].mxu1  ;;  %v2517_v46 = vpack.c.bf16 %v2509_v61, %v2509_v61 }
 0x340   : > { %v3037_v52 = vunpack.c.l.b16 %v2517_v46 }
 0x349   : > { %v6080_v31 = vpop.f32.mrb[20].mxu0 }
 0x34a   : > { %v4424_v34 = vpop.f32.mrb[21].mxu0 }
 0x34b   : > { %v1650_v54 = vpop.f32.mrb[22].mxu0  ;;  %v1848_v57 = vpop.f32.mrb[16].mxu1 }
 0x34c   : > { %v2511_v29 = vsub.f32 %v6041_v3, %v1848_v57  ;;  %v4425_v59 = vpop.f32.mrb[23].mxu0  ;;  %v4460_v15 = vpop.f32.mrb[17].mxu1 }
 0x34d   : > { %v1851_v19 = vpop.f32.mrb[18].mxu1  ;;  %v4943_v15 = vld [vmem:[%s6364_s5] sm:$0xff]  }
 0x34e   : > { %v4461_v8 = vpop.f32.mrb[19].mxu1  ;;  %v2519_v6 = vpack.c.bf16 %v2511_v29, %v2511_v29  ;;  %4716 = vmatprep.mubr.msk.bf16.mxu1 %vm2927_vm12, %v4943_v15 }
 0x350   : > { %v3039_v38 = vunpack.c.l.b16 %v2519_v6 }
 0x352   : > { %v3047_v0 = vrot.slane %v3039_v38, 6 }
 0x359   : > { %v1781_v21 = vpop.f32.mrb[24].mxu0 }
 0x35a   : > { %v2510_v39 = vsub.f32 %v1245_v32, %v1781_v21  ;;  %v4448_v42 = vpop.f32.mrb[25].mxu0 }
 0x35b   : > { %v1784_v43 = vpop.f32.mrb[26].mxu0  ;;  %v1982_v44 = vpop.f32.mrb[20].mxu1 }
 0x35c   : > { %v2518_v2 = vpack.c.bf16 %v2510_v39, %v2510_v39  ;;  %v2513_v35 = vsub.f32 %v1446_v24, %v1982_v44  ;;  %v4449_v30 = vpop.f32.mrb[27].mxu0  ;;  %v4484_v37 = vpop.f32.mrb[21].mxu1 }
 0x35d   : > { %v1985_v45 = vpop.f32.mrb[22].mxu1 }
 0x35e   : > { %v3038_v40 = vunpack.c.l.b16 %v2518_v2  ;;  %v4485_v47 = vpop.f32.mrb[23].mxu1  ;;  %v2521_v7 = vpack.c.bf16 %v2513_v35, %v2513_v35 }
 0x360   : > { %v3045_v63 = vrot.slane %v3038_v40, 7  ;;  %v3041_v24 = vunpack.c.l.b16 %v2521_v7 }
 0x362   : > { %v3046_v3 = vsel %vm2906_vm5, %v3045_v63, %v3037_v52  ;;  %v3051_v28 = vrot.slane %v3041_v24, 4 }
 0x363   : > { %v3048_v4 = vsel %vm2909_vm6, %v3047_v0, %v3046_v3 }
 0x369   : > { %v1915_v9 = vpop.f32.mrb[28].mxu0 }
 0x36a   : > { %v2512_v10 = vsub.f32 %v1379_v33, %v1915_v9  ;;  %v4472_v12 = vpop.f32.mrb[29].mxu0 }
 0x36b   : > { %v1918_v14 = vpop.f32.mrb[30].mxu0  ;;  %v2116_v16 = vpop.f32.mrb[24].mxu1 }
 0x36c   : > { %v2520_v18 = vpack.c.bf16 %v2512_v10, %v2512_v10  ;;  %v2515_v32 = vsub.f32 %v1580_v48, %v2116_v16  ;;  %v4473_v20 = vpop.f32.mrb[31].mxu0  ;;  %v4508_v22 = vpop.f32.mrb[25].mxu1 }
 0x36d   : > { %v2119_v25 = vpop.f32.mrb[26].mxu1 }
 0x36e   : > { %v3040_v26 = vunpack.c.l.b16 %v2520_v18  ;;  %v4509_v27 = vpop.f32.mrb[27].mxu1  ;;  %v2523_v33 = vpack.c.bf16 %v2515_v32, %v2515_v32 }
 0x370   : > { %v3049_v23 = vrot.slane %v3040_v26, 5  ;;  %v3043_v58 = vunpack.c.l.b16 %v2523_v33 }
 0x372   : > { %v3050_v36 = vsel %vm2912_vm7, %v3049_v23, %v3048_v4  ;;  %v3055_v53 = vrot.slane %v3043_v58, 2 }
 0x373   : > { %v3052_v41 = vsel %vm2915_vm8, %v3051_v28, %v3050_v36 }
 0x379   : > { %v2049_v49 = vpop.f32.mrb[32].mxu0 }
 0x37a   : > { %v2514_v50 = vsub.f32 %v1513_v60, %v2049_v49  ;;  %v4496_v51 = vpop.f32.mrb[33].mxu0 }
 0x37b   : > { %v2052_v55 = vpop.f32.mrb[34].mxu0 }
 0x37c   : > { %v2522_v48 = vpack.c.bf16 %v2514_v50, %v2514_v50  ;;  %v4497_v56 = vpop.f32.mrb[35].mxu0 }
 0x37e   : > { %v3042_v62 = vunpack.c.l.b16 %v2522_v48 }
 0x380   : > { %v3053_v1 = vrot.slane %v3042_v62, 3 }
 0x382   : > { %v3054_v61 = vsel %vm2918_vm9, %v3053_v1, %v3052_v41 }
 0x383   : > { %v3056_v5 = vsel %vm2921_vm10, %v3055_v53, %v3054_v61 }
 0x389   : > { %v2183_v11 = vpop.f32.mrb[36].mxu0 }
 0x38a   : > { %v2516_v13 = vsub.f32 %v6080_v31, %v2183_v11  ;;  %v4520_v17 = vpop.f32.mrb[37].mxu0 }
 0x38b   : > { %v2186_v34 = vpop.f32.mrb[38].mxu0 }
 0x38c   : > { %v2524_v60 = vpack.c.bf16 %v2516_v13, %v2516_v13  ;;  %v4521_v54 = vpop.f32.mrb[39].mxu0 }
 0x38e   : > { %v3044_v57 = vunpack.c.l.b16 %v2524_v60 }
 0x390   : > { %v3057_v29 = vrot.slane %v3044_v57, 1 }
 0x392   : > { %v6091_v59 = vsel %vm2924_vm11, %v3057_v29, %v3056_v5 }
 0x3bb   : > { %v2559_v19 = vpop.f32.mrb[28].mxu1 }
 0x3bc   : > { %v4628_v8 = vpop.f32.mrb[29].mxu1  ;;  %v2845_v2 = vpack.c.bf16 %v2559_v19, %v2559_v19  ;;  %v3059_v19 = vpack.c.b16 %v6091_v59, %v6091_v59  ;;  %v4946_v59 = vld [vmem:[%s6364_s5 + $0x18] sm:$0xff]  }
 0x3bd   : > { %v2562_v31 = vpop.f32.mrb[30].mxu1 }
 0x3be   : > { %v4629_v6 = vpop.f32.mrb[31].mxu1  ;;  %v2897_v0 = vunpack.c.l.b16 %v2845_v2  ;;  %v4944_v31 = vld [vmem:[%s6364_s5 + $0x8] sm:$0xff]   ;;  %v4953_v2 = vld [vmem:[%s5346_s16 + $0x10] sm:$0xff]  }
 0x3bf   : > { %v4945_v6 = vld [vmem:[%s6364_s5 + $0x10] sm:$0xff]  }
 0x3cb   : > { %v2639_v21 = vpop.f32.mrb[32].mxu1 }
 0x3cc   : > { %v4652_v39 = vpop.f32.mrb[33].mxu1  ;;  %v2847_v44 = vpack.c.bf16 %v2639_v21, %v2639_v21  ;;  %v4949_v21 = vld [vmem:[%s5346_s16] sm:$0xff]  }
 0x3cd   : > { %v2642_v42 = vpop.f32.mrb[34].mxu1  ;;  %v3073_v39 = vsel %vm2940_vm13, %v3059_v19, 0 }
 0x3ce   : > { %v4653_v43 = vpop.f32.mrb[35].mxu1  ;;  %v2899_v37 = vunpack.c.l.b16 %v2847_v44  ;;  %v4947_v42 = vld [vmem:[%s6363_s4] sm:$0xff]   ;;  %v4951_v44 = vld [vmem:[%s6363_s4 + $0x10] sm:$0xff]  }
 0x3cf   : > { %v4948_v43 = vld [vmem:[%s6363_s4 + $0x8] sm:$0xff]  }
 0x3d0   : > { %v2908_v7 = vrot.slane %v2899_v37, 6  ;;  %v6453_v37 = vld [vmem:[#allocation12_spill] sm:$0xff] }
 0x3d9   : > { %v2599_v46 = vpop.f32.mrb[40].mxu0 }
 0x3da   : > { %v2846_v35 = vpack.c.bf16 %v2599_v46, %v2599_v46  ;;  %v4640_v30 = vpop.f32.mrb[41].mxu0  ;;  %v4950_v46 = vld [vmem:[%s5346_s16 + $0x8] sm:$0xff]  }
 0x3db   : > { %v2602_v38 = vpop.f32.mrb[42].mxu0  ;;  %v2719_v45 = vpop.f32.mrb[36].mxu1  ;;  %v4954_v30 = vld [vmem:[%s5346_s16 + $0x18] sm:$0xff]   ;;  %s5093_s16 = smov 32  }
 0x3dc   : > { %v2898_v40 = vunpack.c.l.b16 %v2846_v35  ;;  %v4641_v47 = vpop.f32.mrb[43].mxu0  ;;  %v4676_v52 = vpop.f32.mrb[37].mxu1  ;;  %v2849_v12 = vpack.c.bf16 %v2719_v45, %v2719_v45  ;;  %v4952_v35 = vld [vmem:[%s6363_s4 + $0x18] sm:$0xff]   ;;  %v6454_v38 = vld [vmem:[#allocation13_spill] sm:$0xff]  ;;  %v6455_v45 = vld [vmem:[#allocation14_spill] sm:$0xff] }
 0x3dd   : > { %v2722_v63 = vpop.f32.mrb[38].mxu1  ;;  %v4026_v47 = vld [vmem:[%s622_s26] ss:$0 sm:$0xff]  ;;  %s5092_s26 = smov 96  }
 0x3de   : > { %v2905_v3 = vrot.slane %v2898_v40, 7  ;;  %v4677_v4 = vpop.f32.mrb[39].mxu1  ;;  %v2901_v32 = vunpack.c.l.b16 %v2849_v12  ;;  %v6456_v40 = vld [vmem:[#allocation15_spill] sm:$0xff] }
 0x3e0   : > { %v2907_v9 = vsel %vm2906_vm5, %v2905_v3, %v2897_v0  ;;  %v2914_v36 = vrot.slane %v2901_v32, 4 }
 0x3e1   : > { %v2910_v10 = vsel %vm2909_vm6, %v2908_v7, %v2907_v9 }
 0x3e9   : > { %v2679_v14 = vpop.f32.mrb[44].mxu0 }
 0x3ea   : > { %v2848_v16 = vpack.c.bf16 %v2679_v14, %v2679_v14  ;;  %v4664_v18 = vpop.f32.mrb[45].mxu0 }
 0x3eb   : > { %v2682_v20 = vpop.f32.mrb[46].mxu0  ;;  %v2799_v22 = vpop.f32.mrb[40].mxu1 }
 0x3ec   : > { %v2900_v24 = vunpack.c.l.b16 %v2848_v16  ;;  %v4665_v25 = vpop.f32.mrb[47].mxu0  ;;  %v4700_v26 = vpop.f32.mrb[41].mxu1  ;;  %v2851_v49 = vpack.c.bf16 %v2799_v22, %v2799_v22 }
 0x3ed   : > { %v2802_v27 = vpop.f32.mrb[42].mxu1 }
 0x3ee   : > { %v2911_v23 = vrot.slane %v2900_v24, 5  ;;  %v4701_v28 = vpop.f32.mrb[43].mxu1  ;;  %v2903_v48 = vunpack.c.l.b16 %v2851_v49 }
 0x3f0   : > { %v2913_v41 = vsel %vm2912_vm7, %v2911_v23, %v2910_v10  ;;  %v2920_v53 = vrot.slane %v2903_v48, 2 }
 0x3f1   : > { %v2916_v33 = vsel %vm2915_vm8, %v2914_v36, %v2913_v41 }
 0x3f9   : > { %v2759_v50 = vpop.f32.mrb[48].mxu0 }
 0x3fa   : > { %v2850_v51 = vpack.c.bf16 %v2759_v50, %v2759_v50  ;;  %v4688_v55 = vpop.f32.mrb[49].mxu0 }
 0x3fb   : > { %v2762_v56 = vpop.f32.mrb[50].mxu0 }
 0x3fc   : > { %v2902_v58 = vunpack.c.l.b16 %v2850_v51  ;;  %v4689_v62 = vpop.f32.mrb[51].mxu0 }
 0x3fe   : > { %v2917_v1 = vrot.slane %v2902_v58, 3 }
 0x400   : > { %v2919_v61 = vsel %vm2918_vm9, %v2917_v1, %v2916_v33 }
 0x401   : > { %v2922_v5 = vsel %vm2921_vm10, %v2920_v53, %v2919_v61 }
 0x409   : > { %v2839_v11 = vpop.f32.mrb[52].mxu0 }
 0x40a   : > { %v2852_v13 = vpack.c.bf16 %v2839_v11, %v2839_v11  ;;  %v4712_v17 = vpop.f32.mrb[53].mxu0 }
 0x40b   : > { %v2842_v34 = vpop.f32.mrb[54].mxu0 }
 0x40c   : > { %v2904_v60 = vunpack.c.l.b16 %v2852_v13  ;;  %v4713_v54 = vpop.f32.mrb[55].mxu0 }
 0x40e   : > { %v2923_v57 = vrot.slane %v2904_v60, 1  ;;  %v6457_v60 = vld [vmem:[#allocation16_spill] sm:$0xff] }
 0x40f   : > { %v6162_v54 = vsub.s32 0, %v6457_v60 }
 0x410   : > { %v2925_v29 = vsel %vm2924_vm11, %v2923_v57, %v2922_v5 }
 0x411   : > { %v2926_v15 = vpack.c.b16 %v2925_v29, %v2925_v29 }
 0x413   : > { %4824 = vmatprep.subr.msk.bf16.mxu1 %vm2940_vm13, %v2926_v15  ;;  %v2942_v8 = vsel %vm2940_vm13, %v2926_v15, 0 }
 0x414   : > { %4715 = vmatpush3.bf16.msra.mxu1 %v2942_v8 }
 0x415   : > { %4825 = vmatprep.subr.msk.bf16.mxu1 %vm2940_vm13, %v3059_v19 }
 0x417   : > { %4717 = vmatmul.mubr.msk.bf16.vlgmr.msra.gmra.mrb[44].mxu1 %vm2927_vm12, %v4944_v31 }
 0x418   : > { %4725 = vmatpush3.bf16.msra.mxu1 %v3073_v39  ;;  %4720 = vmatprep.mubr.msk.bf16.mxu1 %vm2927_vm12, %v4945_v6 }
 0x419   : > { %4734 = vmatprep.subr.bf16.mxu1 %v4949_v21 }
 0x41f   : > { %4721 = vmatmul.mubr.msk.bf16.gmra.mrb[48].mxu1 %vm2927_vm12, %v4946_v59 }
 0x420   : > { %4726 = vmatprep.mubr.msk.bf16.mxu1 %vm2927_vm12, %v4947_v42 }
 0x427   : > { %4727 = vmatmul.mubr.msk.bf16.vlgmr.msra.gmra.mrb[44].mxu1 %vm2927_vm12, %v4948_v43 }
 0x428   : > { %4735 = vmatpush3.bf16.msra.mxu1 %v4949_v21  ;;  %4730 = vmatprep.mubr.msk.bf16.mxu1 %vm2927_vm12, %v4951_v44 }
 0x429   : > { %4736 = vmatprep.subr.bf16.mxu1 %v4950_v46 }
 0x42c   : > { %4737 = vmatpush3.bf16.msra.mxu1 %v4950_v46 }
 0x42d   : > { %4738 = vmatprep.subr.bf16.mxu1 %v4953_v2 }
 0x42f   : > { %4731 = vmatmul.mubr.msk.bf16.gmra.mrb[48].mxu1 %vm2927_vm12, %v4952_v35 }
 0x430   : > { %4739 = vmatpush3.bf16.msra.mxu1 %v4953_v2  ;;  %4742 = vmatprep.mubr.msk.bf16.mxu1 %vm812_vm4, %v6453_v37 }
 0x431   : > { %4740 = vmatprep.subr.bf16.mxu1 %v4954_v30 }
 0x434   : > { %4741 = vmatpush3.bf16.msra.mxu1 %v4954_v30 }
 0x437   : > { %4743 = vmatmul.mubr.msk.bf16.vlgmr.msra.gmra.mrb[44].mxu1 %vm812_vm4, %v6454_v38 }
 0x438   : > { %4746 = vmatprep.mubr.msk.bf16.mxu1 %vm812_vm4, %v6455_v45 }
 0x43f   : > { %4747 = vmatmul.mubr.msk.bf16.gmra.mrb[48].mxu1 %vm812_vm4, %v6456_v40 }
 0x50a   : > { %v4744_v52 = vpop.f32.mrb[44].mxu1 }
 0x50b   : > { %v3225_v63 = vpop.f32.mrb[45].mxu1  ;;  %v3234_v7 = vadd.f32 %v4744_v52, %v4026_v47 }
 0x50c   : > { %v3226_v0 = vadd.f32 %v4026_v47, %v3225_v63  ;;  %v4745_v3 = vpop.f32.mrb[46].mxu1 }
 0x50d   : > { %v3228_v4 = vpop.f32.mrb[47].mxu1  ;;  %v3237_v12 = vadd.f32 %v4745_v3, %v4026_v47  ;;  %v3267_v18 = vsel %vm812_vm4, %v3234_v7, 0.0 }
 0x50e   : > { %v3229_v9 = vadd.f32 %v4026_v47, %v3228_v4  ;;  %v3264_v10 = vsel %vm812_vm4, %v3226_v0, 0.0 }
 0x50f   : > { %v3269_v24 = vsel %vm812_vm4, %v3237_v12, 0.0 }
 0x510   : > { %v3265_v14 = vsel %vm812_vm4, %v3229_v9, 0.0 }
 0x511   : > { %v3266_v16 = vadd.f32 %v3265_v14, %v3264_v10 }
 0x512   : > { %v4748_v32 = vpop.f32.mrb[48].mxu1 }
 0x513   : > { %v3268_v20 = vadd.f32 %v3267_v18, %v3266_v16  ;;  %v3241_v22 = vpop.f32.mrb[49].mxu1  ;;  %v3250_v28 = vadd.f32 %v4748_v32, %v4026_v47 }
 0x514   : > { %v3242_v25 = vadd.f32 %v4026_v47, %v3241_v22  ;;  %v4749_v26 = vpop.f32.mrb[50].mxu1 }
 0x515   : > { %v3270_v27 = vadd.f32 %v3269_v24, %v3268_v20  ;;  %v3244_v23 = vpop.f32.mrb[51].mxu1  ;;  %v3253_v49 = vadd.f32 %v4749_v26, %v4026_v47  ;;  %v3275_v55 = vsel %vm812_vm4, %v3250_v28, 0.0 }
 0x516   : > { %v3271_v36 = vsel %vm812_vm4, %v3242_v25, 0.0  ;;  %v3245_v41 = vadd.f32 %v4026_v47, %v3244_v23 }
 0x517   : > { %v3272_v33 = vadd.f32 %v3271_v36, %v3270_v27  ;;  %v3277_v56 = vsel %vm812_vm4, %v3253_v49, 0.0 }
 0x518   : > { %v3273_v50 = vsel %vm812_vm4, %v3245_v41, 0.0 }
 0x519   : > { %v3274_v51 = vadd.f32 %v3273_v50, %v3272_v33  ;;  %v3351_v33 = vld [vmem:[%s625_s23] sm:$0x1] }
 0x51b   : > { %v3276_v48 = vadd.f32 %v3275_v55, %v3274_v51 }
 0x51d   : > { %v3278_v58 = vadd.f32 %v3277_v56, %v3276_v48  ;;  %v4035_v48 = vld [vmem:[%s628_s20] ss:$0 sm:$0xff] }
 0x51f   : > { %v3279_v62 = vrot.slane %v3278_v58, 4 }
 0x521   : > { %v3280_v1 = vadd.f32 %v3279_v62, %v3278_v58 }
 0x523   : > { %v3281_v53 = vrot.slane %v3280_v1, 2 }
 0x525   : > { %v3282_v61 = vadd.f32 %v3281_v53, %v3280_v1 }
 0x527   : > { %v3283_v5 = vrot.slane %v3282_v61, 1 }
 0x529   : > { %v3284_v11 = vadd.f32 %v3283_v5, %v3282_v61 }
 0x52b   : > { %3286 = vrot.lane.b32.xlu0 %v3284_v11, %s5092_s26 }
 0x59d   : > { %v3287_v13 = vpop.permute.xlu0 %3286 }
 0x59e   : > { %v3289_v17 = vadd.f32 %v3287_v13, %v3284_v11 }
 0x5a0   : > { %v3290_v34 = vmul.f32 0.0078125, %v3289_v17 }
 0x5a2   : > { %3292 = vrot.lane.b32.xlu0 %v3290_v34, %s5093_s16 }
 0x614   : > { %v3293_v57 = vpop.permute.xlu0 %3292 }
 0x615   : > { %v3296_v29 = vsel %vm3295_vm14, %v3290_v34, %v3293_v57 }
 0x616   : > { %v3300_v15 = vrot.slane %v3296_v29, %v6162_v54 }
 0x618   : > { %v3301_v19 = vsub.f32 %v3226_v0, %v3300_v15  ;;  %v3302_v8 = vsub.f32 %v3229_v9, %v3300_v15  ;;  %v3303_v31 = vsub.f32 %v3234_v7, %v3300_v15  ;;  %v3304_v6 = vsub.f32 %v3237_v12, %v3300_v15 }
 0x619   : > { %v3305_v21 = vsub.f32 %v3242_v25, %v3300_v15  ;;  %v3306_v43 = vsub.f32 %v3245_v41, %v3300_v15  ;;  %v3307_v30 = vsub.f32 %v3250_v28, %v3300_v15  ;;  %v3308_v40 = vsub.f32 %v3253_v49, %v3300_v15 }
 0x61a   : > { %v3309_v39 = vmul.f32 %v3301_v19, %v3301_v19  ;;  %v3310_v59 = vmul.f32 %v3302_v8, %v3302_v8  ;;  %v3311_v42 = vmul.f32 %v3303_v31, %v3303_v31  ;;  %v3312_v44 = vmul.f32 %v3304_v6, %v3304_v6 }
 0x61b   : > { %v3313_v37 = vmul.f32 %v3305_v21, %v3305_v21  ;;  %v3314_v47 = vmul.f32 %v3306_v43, %v3306_v43  ;;  %v3315_v0 = vmul.f32 %v3307_v30, %v3307_v30  ;;  %v3316_v7 = vmul.f32 %v3308_v40, %v3308_v40 }
 0x61c   : > { %v3317_v46 = vsel %vm812_vm4, %v3309_v39, 0.0  ;;  %v3318_v2 = vsel %vm812_vm4, %v3310_v59, 0.0  ;;  %v3320_v38 = vsel %vm812_vm4, %v3311_v42, 0.0  ;;  %v3322_v52 = vsel %vm812_vm4, %v3312_v44, 0.0 }
 0x61d   : > { %v3319_v35 = vadd.f32 %v3318_v2, %v3317_v46  ;;  %v3324_v3 = vsel %vm812_vm4, %v3313_v37, 0.0  ;;  %v3326_v9 = vsel %vm812_vm4, %v3314_v47, 0.0  ;;  %v3328_v12 = vsel %vm812_vm4, %v3315_v0, 0.0 }
 0x61e   : > { %v3330_v16 = vsel %vm812_vm4, %v3316_v7, 0.0 }
 0x61f   : > { %v3321_v45 = vadd.f32 %v3320_v38, %v3319_v35 }
 0x621   : > { %v3323_v63 = vadd.f32 %v3322_v52, %v3321_v45 }
 0x623   : > { %v3325_v4 = vadd.f32 %v3324_v3, %v3323_v63 }
 0x625   : > { %v3327_v10 = vadd.f32 %v3326_v9, %v3325_v4 }
 0x627   : > { %v3329_v14 = vadd.f32 %v3328_v12, %v3327_v10 }
 0x629   : > { %v3331_v18 = vadd.f32 %v3330_v16, %v3329_v14 }
 0x62b   : > { %v3332_v32 = vrot.slane %v3331_v18, 4 }
 0x62d   : > { %v3333_v20 = vadd.f32 %v3332_v32, %v3331_v18 }
 0x62f   : > { %v3334_v22 = vrot.slane %v3333_v20, 2 }
 0x631   : > { %v3335_v24 = vadd.f32 %v3334_v22, %v3333_v20 }
 0x633   : > { %v3336_v25 = vrot.slane %v3335_v24, 1 }
 0x635   : > { %v3337_v26 = vadd.f32 %v3336_v25, %v3335_v24 }
 0x637   : > { %3339 = vrot.lane.b32.xlu1 %v3337_v26, %s5092_s26 }
 0x6a9   : > { %v3340_v27 = vpop.permute.xlu1 %3339 }
 0x6aa   : > { %v3342_v23 = vadd.f32 %v3340_v27, %v3337_v26 }
 0x6ac   : > { %v3343_v28 = vmul.f32 0.0078125, %v3342_v23 }
 0x6ae   : > { %v3344_v36 = vadd.f32 1e-05, %v3343_v28 }
 0x6b0   : > { %4955 = vrsqrt.f32 %v3344_v36 }
 0x6ba   : > { %v4956_v41 = vpop.eup %4955 }
 0x6bb   : > { %3347 = vrot.lane.b32.xlu1 %v4956_v41, %s5093_s16 }
 0x72d   : > { %v3348_v49 = vpop.permute.xlu1 %3347 }
 0x72e   : > { %v3350_v50 = vsel %vm3295_vm14, %v4956_v41, %v3348_v49 }
 0x72f   : > { %v3352_v51 = vmul.f32 %v3351_v33, %v3350_v50 }
 0x730   : > { %3384 = sbr.rel (%p4036_p3) target bundleno = 1853 (0x73d), region = 100 }
 0x731   : > { %v3356_v55 = vrot.slane %v3352_v51, %v6162_v54 }
 0x733   : > { %v3357_v56 = vmul.f32 %v3356_v55, %v3301_v19  ;;  %v3358_v58 = vmul.f32 %v3356_v55, %v3302_v8  ;;  %v3359_v62 = vmul.f32 %v3356_v55, %v3303_v31  ;;  %v3360_v1 = vmul.f32 %v3356_v55, %v3304_v6 }
 0x734   : > { %v3361_v53 = vmul.f32 %v3356_v55, %v3305_v21  ;;  %v3362_v61 = vmul.f32 %v3356_v55, %v3306_v43  ;;  %v3363_v5 = vmul.f32 %v3356_v55, %v3307_v30  ;;  %v3364_v11 = vmul.f32 %v3356_v55, %v3308_v40 }
 0x735   : > { %v6188_v13 = vadd.f32 %v4035_v48, %v3357_v56  ;;  %v6190_v17 = vadd.f32 %v4035_v48, %v3358_v58  ;;  %v6192_v34 = vadd.f32 %v4035_v48, %v3359_v62  ;;  %v6194_v60 = vadd.f32 %v4035_v48, %v3360_v1 }
 0x736   : > { %v6196_v57 = vadd.f32 %v4035_v48, %v3361_v53  ;;  %v6198_v29 = vadd.f32 %v4035_v48, %v3362_v61  ;;  %v6200_v15 = vadd.f32 %v4035_v48, %v3363_v5  ;;  %v6202_v19 = vadd.f32 %v4035_v48, %v3364_v11 }
 0x737   : > { %v3385_v8 = vmax.f32 %v6188_v13, 0.0  ;;  %v3386_v31 = vmax.f32 %v6190_v17, 0.0  ;;  %v3387_v6 = vmax.f32 %v6192_v34, 0.0  ;;  %v3388_v21 = vmax.f32 %v6194_v60, 0.0 }
 0x738   : > { %v3389_v39 = vmax.f32 %v6196_v57, 0.0  ;;  %v3390_v59 = vmax.f32 %v6198_v29, 0.0  ;;  %v3391_v42 = vmax.f32 %v6200_v15, 0.0  ;;  %v3392_v43 = vmax.f32 %v6202_v19, 0.0 }
 0x739   : > { %3393 = vst.msk [vmem:[#allocation2] sm:$0xff] %vm812_vm4, %v3385_v8  ;;  %3394 = vst.msk [vmem:[#allocation2 + $0x8] sm:$0xff] %vm812_vm4, %v3386_v31 }
 0x73a   : > { %3395 = vst.msk [vmem:[#allocation2 + $0x10] sm:$0xff] %vm812_vm4, %v3387_v6  ;;  %3396 = vst.msk [vmem:[#allocation2 + $0x18] sm:$0xff] %vm812_vm4, %v3388_v21 }
 0x73b   : > { %3397 = vst.msk [vmem:[#allocation2 + $0x20] sm:$0xff] %vm812_vm4, %v3389_v39  ;;  %3398 = vst.msk [vmem:[#allocation2 + $0x28] sm:$0xff] %vm812_vm4, %v3390_v59 }
 0x73c   : > { %3399 = vst.msk [vmem:[#allocation2 + $0x30] sm:$0xff] %vm812_vm4, %v3391_v42  ;;  %3400 = vst.msk [vmem:[#allocation2 + $0x38] sm:$0xff] %vm812_vm4, %v3392_v43 }
 0x73d PF: > { %p4037_p6 = scmp.ne.s32.totalorder %s5199_s25, 3 }
 0x73e   : > { %v4957_v44 = vld [vmem:[%s6371_s12 + $0x4] ss:$8 sps:$4 sm:$0xff] (!%p4037_p6)   ;;  %v4959_v46 = vld [vmem:[%s6371_s12] ss:$8 sps:$4 sm:$0xff] (!%p4037_p6)   ;;  %v5094_v2 = vmov (!%p4037_p6), 0   ;;  %v4973_v3 = vld [vmem:[%s6373_s14 + $0x50] sm:$0xff] (!%p4037_p6)   ;;  %v3404_v4 = vpack.c.bf16 (!%p4037_p6), %v6190_v17, %v6188_v13  ;;  %v3405_v14 = vpack.c.bf16 (!%p4037_p6), %v6194_v60, %v6192_v34  ;;  %v3406_v32 = vpack.c.bf16 (!%p4037_p6), %v6198_v29, %v6196_v57 }
 0x73f   : > { %3403 = sbr.rel (%p4037_p6) target bundleno = 2337 (0x921), region = 104  ;;  %3512 = vmatprep.mubr.bf16.mxu0 (!%p4037_p6), %v5094_v2  ;;  %3480 = vmatprep.subr.bf16.mxu0 (!%p4037_p6), %v4957_v44  ;;  %v4960_v35 = vld [vmem:[%s6371_s12 + $0x14] ss:$8 sps:$4 sm:$0xff] (!%p4037_p6)   ;;  %v4962_v30 = vld [vmem:[%s6371_s12 + $0x10] ss:$8 sps:$4 sm:$0xff] (!%p4037_p6)   ;;  %v4969_v40 = vld [vmem:[%s6373_s14 + $0x40] sm:$0xff] (!%p4037_p6)   ;;  %v3407_v20 = vpack.c.bf16 (!%p4037_p6), %v6202_v19, %v6200_v15 }
 0x740   : > { %3481 = vmatpush1.bf16.msra.mxu0 (!%p4037_p6), %v4959_v46  ;;  %v4963_v37 = vld [vmem:[%s6371_s12 + $0x24] ss:$8 sps:$4 sm:$0xff] (!%p4037_p6)   ;;  %v4965_v38 = vld [vmem:[%s6371_s12 + $0x20] ss:$8 sps:$4 sm:$0xff] (!%p4037_p6)   ;;  %v4966_v45 = vld [vmem:[%s6371_s12 + $0x34] ss:$8 sps:$4 sm:$0xff] (!%p4037_p6)   ;;  %4808 = vmatprep.subr.bf16.mxu1 (!%p4037_p6), %v4969_v40 }
 0x741   : > { %3482 = vmatprep.subr.bf16.mxu0 (!%p4037_p6), %v4960_v35  ;;  %v4970_v47 = vld [vmem:[%s6373_s14] sm:$0xff] (!%p4037_p6)   ;;  %v4971_v52 = vld [vmem:[%s6373_s14 + $0x48] sm:$0xff] (!%p4037_p6)   ;;  %v4968_v63 = vld [vmem:[%s6371_s12 + $0x30] ss:$8 sps:$4 sm:$0xff] (!%p4037_p6)   ;;  %s6458_s30 = sld [smem:[#allocation33_spill]] (!%p4037_p6)  ;;  %s6460_s19 = sld [smem:[#allocation34_spill]] (!%p4037_p6) }
 0x742   : > { %4816 = vmatpush3.bf16.msra.mxu1 (!%p4037_p6), %v4970_v47  ;;  %v4972_v0 = vld [vmem:[%s6373_s14 + $0x8] sm:$0xff] (!%p4037_p6)   ;;  %v4974_v7 = vld [vmem:[%s6373_s14 + $0x10] sm:$0xff] (!%p4037_p6)   ;;  %v4975_v9 = vld [vmem:[%s6373_s14 + $0x58] sm:$0xff] (!%p4037_p6)   ;;  %vm3777_vm15 = vcmask (!%p4037_p6), 15360   ;;  %s6461_s20 = sld [smem:[#allocation35_spill]] (!%p4037_p6) }
 0x743   : > { %4809 = vmatprep.subr.bf16.mxu1 (!%p4037_p6), %v4971_v52  ;;  %v4976_v10 = vld [vmem:[%s6373_s14 + $0x18] sm:$0xff] (!%p4037_p6)   ;;  %v4977_v12 = vld [vmem:[%s6373_s14 + $0x60] sm:$0xff] (!%p4037_p6)   ;;  %v4979_v18 = vld [vmem:[%s6373_s14 + $0x68] sm:$0xff] (!%p4037_p6)  }
 0x744   : > { %3483 = vmatpush1.bf16.msra.mxu0 (!%p4037_p6), %v4962_v30  ;;  %v4978_v16 = vld [vmem:[%s6373_s14 + $0x20] sm:$0xff] (!%p4037_p6)   ;;  %v4980_v22 = vld [vmem:[%s6373_s14 + $0x28] sm:$0xff] (!%p4037_p6)   ;;  %v4981_v24 = vld [vmem:[%s6373_s14 + $0x70] sm:$0xff] (!%p4037_p6)  }
 0x745   : > { %3484 = vmatprep.subr.bf16.mxu0 (!%p4037_p6), %v4963_v37  ;;  %v4982_v25 = vld [vmem:[%s6373_s14 + $0x30] sm:$0xff] (!%p4037_p6)   ;;  %v4983_v26 = vld [vmem:[%s6373_s14 + $0x78] sm:$0xff] (!%p4037_p6)   ;;  %v6459_v28 = vld [vmem:[#allocation16_spill] sm:$0xff] (!%p4037_p6) }
 0x746   : > { %4817 = vmatpush3.bf16.msra.mxu1 %v4972_v0  ;;  %v4984_v27 = vld [vmem:[%s6373_s14 + $0x38] sm:$0xff]   ;;  %v3424_v36 = vsub.s32 1, %v6459_v28 }
 0x747   : > { %4810 = vmatprep.subr.bf16.mxu1 %v4973_v3  ;;  %v3416_v23 = vld [vmem:[%s6458_s30] sm:$0x3] }
 0x748   : > { %3485 = vmatpush1.bf16.msra.mxu0 %v4965_v38  ;;  %v3421_v41 = vrot.slane %v3416_v23, %v6162_v54  ;;  %v3425_v33 = vrot.slane %v3416_v23, %v3424_v36 }
 0x749   : > { %3486 = vmatprep.subr.bf16.mxu0 %v4966_v45 }
 0x74a   : > { %4818 = vmatpush3.bf16.msra.mxu1 %v4974_v7 }
 0x74b   : > { %4811 = vmatprep.subr.bf16.mxu1 %v4975_v9 }
 0x74c   : > { %3487 = vmatpush1.bf16.msra.mxu0 %v4968_v63 }
 0x74d   : > { %4264 = vmatprep.subr.bf16.mxu0 %v4969_v40 }
 0x74e   : > { %4819 = vmatpush3.bf16.msra.mxu1 %v4976_v10 }
 0x74f   : > { %4046 = vmatmul.mubr.msk.bf16.vlgmr.msra.gmra.mrb[0].mxu0 %vm812_vm4, %v3404_v4  ;;  %4812 = vmatprep.subr.bf16.mxu1 %v4977_v12 }
 0x750   : > { %3522 = vmatprep.mubr.bf16.mxu0 %v5094_v2  ;;  %4265 = vmatpush3.bf16.msra.mxu0 %v4970_v47 }
 0x751   : > { %4266 = vmatprep.subr.bf16.mxu0 %v4971_v52 }
 0x752   : > { %4820 = vmatpush3.bf16.msra.mxu1 %v4978_v16 }
 0x753   : > { %4813 = vmatprep.subr.bf16.mxu1 %v4979_v18 }
 0x754   : > { %4267 = vmatpush3.bf16.msra.mxu0 %v4972_v0 }
 0x755   : > { %4268 = vmatprep.subr.bf16.mxu0 %v4973_v3 }
 0x756   : > { %4821 = vmatpush3.bf16.msra.mxu1 %v4980_v22 }
 0x757   : > { %4047 = vmatmul.mubr.msk.bf16.gmra.mrb[4].mxu0 %vm812_vm4, %v3405_v14  ;;  %4814 = vmatprep.subr.bf16.mxu1 %v4981_v24 }
 0x758   : > { %3532 = vmatprep.mubr.bf16.mxu0 %v5094_v2  ;;  %4269 = vmatpush3.bf16.msra.mxu0 %v4974_v7 }
 0x759   : > { %4270 = vmatprep.subr.bf16.mxu0 %v4975_v9 }
 0x75a   : > { %4822 = vmatpush3.bf16.msra.mxu1 %v4982_v25 }
 0x75b   : > { %4815 = vmatprep.subr.bf16.mxu1 %v4983_v26 }
 0x75c   : > { %4271 = vmatpush3.bf16.msra.mxu0 %v4976_v10 }
 0x75d   : > { %4272 = vmatprep.subr.bf16.mxu0 %v4977_v12 }
 0x75e   : > { %4823 = vmatpush3.bf16.msra.mxu1 %v4984_v27 }
 0x75f   : > { %4048 = vmatmul.mubr.msk.bf16.gmra.mrb[8].mxu0 %vm812_vm4, %v3406_v32 }
 0x760   : > { %3542 = vmatprep.mubr.bf16.mxu0 %v5094_v2  ;;  %4273 = vmatpush3.bf16.msra.mxu0 %v4978_v16 }
 0x761   : > { %4274 = vmatprep.subr.bf16.mxu0 %v4979_v18 }
 0x764   : > { %4275 = vmatpush3.bf16.msra.mxu0 %v4980_v22 }
 0x765   : > { %4276 = vmatprep.subr.bf16.mxu0 %v4981_v24 }
 0x767   : > { %4049 = vmatmul.mubr.msk.bf16.gmra.mrb[12].mxu0 %vm812_vm4, %v3407_v20 }
 0x768   : > { %4277 = vmatpush3.bf16.msra.mxu0 %v4982_v25 }
 0x769   : > { %4278 = vmatprep.subr.bf16.mxu0 %v4983_v26  ;;  %v4050_v26 = vld [vmem:[%s6460_s19] ss:$0 sm:$0xff] }
 0x76c   : > { %4279 = vmatpush3.bf16.msra.mxu0 %v4984_v27 }
 0x822   : > { %v3514_v49 = vpop.f32.mrb[0].mxu0 }
 0x823   : > { %v3515_v50 = vadd.f32 %v3514_v49, %v3421_v41  ;;  %v3516_v51 = vpop.f32.mrb[1].mxu0 }
 0x824   : > { %v3517_v55 = vadd.f32 %v3516_v51, %v3425_v33  ;;  %v3518_v48 = vpop.f32.mrb[2].mxu0 }
 0x825   : > { %v3519_v56 = vadd.f32 %v3518_v48, %v3421_v41  ;;  %v3520_v58 = vpop.f32.mrb[3].mxu0  ;;  %v3553_v1 = vmax.f32 %v3515_v50, 0.0 }
 0x826   : > { %v3521_v62 = vadd.f32 %v3520_v58, %v3425_v33  ;;  %v3554_v61 = vmax.f32 %v3517_v55, 0.0 }
 0x827   : > { %v3555_v53 = vmax.f32 %v3519_v56, 0.0 }
 0x828   : > { %v3556_v5 = vmax.f32 %v3521_v62, 0.0 }
 0x829   : > { %v3569_v11 = vpack.c.bf16 %v3555_v53, %v3553_v1 }
 0x82a   : > { %v3570_v13 = vpack.c.bf16 %v3556_v5, %v3554_v61  ;;  %v3524_v17 = vpop.f32.mrb[4].mxu0 }
 0x82b   : > { %v3525_v34 = vadd.f32 %v3524_v17, %v3421_v41  ;;  %v3526_v60 = vpop.f32.mrb[5].mxu0 }
 0x82c   : > { %v3527_v57 = vadd.f32 %v3526_v60, %v3425_v33  ;;  %v3528_v54 = vpop.f32.mrb[6].mxu0  ;;  %3744 = vmatprep.mubr.bf16.mxu0 %v3570_v13 }
 0x82d   : > { %v3529_v29 = vadd.f32 %v3528_v54, %v3421_v41  ;;  %v3530_v15 = vpop.f32.mrb[7].mxu0  ;;  %3745 = vmatmul.mubr.bf16.vlgmr.msra.gmra.mrb[16].mxu0 %v3569_v11  ;;  %v3557_v8 = vmax.f32 %v3525_v34, 0.0 }
 0x82e   : > { %v3531_v19 = vadd.f32 %v3530_v15, %v3425_v33  ;;  %v3558_v6 = vmax.f32 %v3527_v57, 0.0 }
 0x82f   : > { %v3559_v31 = vmax.f32 %v3529_v29, 0.0 }
 0x830   : > { %v3560_v21 = vmax.f32 %v3531_v19, 0.0 }
 0x831   : > { %v3571_v39 = vpack.c.bf16 %v3559_v31, %v3557_v8 }
 0x832   : > { %v3534_v59 = vpop.f32.mrb[8].mxu0  ;;  %v3572_v42 = vpack.c.bf16 %v3560_v21, %v3558_v6 }
 0x833   : > { %v3535_v43 = vadd.f32 %v3534_v59, %v3421_v41  ;;  %v3536_v44 = vpop.f32.mrb[9].mxu0 }
 0x834   : > { %v3537_v46 = vadd.f32 %v3536_v44, %v3425_v33  ;;  %v3538_v2 = vpop.f32.mrb[10].mxu0  ;;  %3752 = vmatprep.mubr.bf16.mxu1 %v3572_v42 }
 0x835   : > { %v3539_v35 = vadd.f32 %v3538_v2, %v3421_v41  ;;  %v3540_v30 = vpop.f32.mrb[11].mxu0  ;;  %3753 = vmatmul.mubr.bf16.vlgmr.msra.gmra.mrb[0].mxu1 %v3571_v39  ;;  %v3561_v38 = vmax.f32 %v3535_v43, 0.0 }
 0x836   : > { %v3541_v37 = vadd.f32 %v3540_v30, %v3425_v33  ;;  %v3562_v40 = vmax.f32 %v3537_v46, 0.0 }
 0x837   : > { %v3563_v45 = vmax.f32 %v3539_v35, 0.0 }
 0x838   : > { %v3564_v47 = vmax.f32 %v3541_v37, 0.0 }
 0x839   : > { %v3573_v52 = vpack.c.bf16 %v3563_v45, %v3561_v38 }
 0x83a   : > { %v3574_v63 = vpack.c.bf16 %v3564_v47, %v3562_v40  ;;  %v3544_v0 = vpop.f32.mrb[12].mxu0 }
 0x83b   : > { %v3545_v3 = vadd.f32 %v3544_v0, %v3421_v41  ;;  %v3546_v4 = vpop.f32.mrb[13].mxu0 }
 0x83c   : > { %v3547_v7 = vadd.f32 %v3546_v4, %v3425_v33  ;;  %v3548_v9 = vpop.f32.mrb[14].mxu0  ;;  %3760 = vmatprep.mubr.bf16.mxu1 %v3574_v63 }
 0x83d   : > { %v3549_v10 = vadd.f32 %v3548_v9, %v3421_v41  ;;  %v3550_v12 = vpop.f32.mrb[15].mxu0  ;;  %3761 = vmatmul.mubr.bf16.gmra.mrb[4].mxu1 %v3573_v52  ;;  %v3565_v16 = vmax.f32 %v3545_v3, 0.0 }
 0x83e   : > { %v3551_v14 = vadd.f32 %v3550_v12, %v3425_v33  ;;  %v3566_v32 = vmax.f32 %v3547_v7, 0.0 }
 0x83f   : > { %v3567_v18 = vmax.f32 %v3549_v10, 0.0 }
 0x840   : > { %v3568_v20 = vmax.f32 %v3551_v14, 0.0 }
 0x841   : > { %v3575_v22 = vpack.c.bf16 %v3567_v18, %v3565_v16 }
 0x842   : > { %v3576_v24 = vpack.c.bf16 %v3568_v20, %v3566_v32 }
 0x844   : > { %3768 = vmatprep.mubr.bf16.mxu1 %v3576_v24 }
 0x845   : > { %3769 = vmatmul.mubr.bf16.gmra.mrb[8].mxu1 %v3575_v22 }
 0x900   : > { %v4280_v25 = vpop.f32.mrb[16].mxu0 }
 0x901   : > { %v4281_v27 = vpop.f32.mrb[17].mxu0 }
 0x902   : > { %v4282_v23 = vadd.f32 %v4281_v27, %v4280_v25  ;;  %v4283_v28 = vpop.f32.mrb[18].mxu0 }
 0x903   : > { %v4284_v36 = vpop.f32.mrb[19].mxu0 }
 0x904   : > { %v3747_v41 = vadd.f32 %v4282_v23, %v4050_v26  ;;  %v4285_v33 = vadd.f32 %v4284_v36, %v4283_v28 }
 0x906   : > { %3778 = vst.msk [vmem:[%s6461_s20] sm:$0xff] %vm3777_vm15, %v3747_v41  ;;  %v3750_v49 = vadd.f32 %v4285_v33, %v4050_v26 }
 0x908   : > { %3779 = vst.msk [vmem:[%s6461_s20 + $0x8] sm:$0xff] %vm3777_vm15, %v3750_v49  ;;  %v4286_v50 = vpop.f32.mrb[0].mxu1 }
 0x909   : > { %v4287_v51 = vpop.f32.mrb[1].mxu1 }
 0x90a   : > { %v4288_v55 = vadd.f32 %v4287_v51, %v4286_v50  ;;  %v4289_v48 = vpop.f32.mrb[2].mxu1 }
 0x90b   : > { %v4290_v56 = vpop.f32.mrb[3].mxu1 }
 0x90c   : > { %v3755_v58 = vadd.f32 %v4288_v55, %v4050_v26  ;;  %v4291_v62 = vadd.f32 %v4290_v56, %v4289_v48 }
 0x90e   : > { %3780 = vst.msk [vmem:[%s6461_s20 + $0x10] sm:$0xff] %vm3777_vm15, %v3755_v58  ;;  %v3758_v1 = vadd.f32 %v4291_v62, %v4050_v26 }
 0x910   : > { %3781 = vst.msk [vmem:[%s6461_s20 + $0x18] sm:$0xff] %vm3777_vm15, %v3758_v1  ;;  %v4292_v53 = vpop.f32.mrb[4].mxu1 }
 0x911   : > { %v4293_v61 = vpop.f32.mrb[5].mxu1 }
 0x912   : > { %v4294_v5 = vadd.f32 %v4293_v61, %v4292_v53  ;;  %v4295_v11 = vpop.f32.mrb[6].mxu1 }
 0x913   : > { %v4296_v13 = vpop.f32.mrb[7].mxu1 }
 0x914   : > { %v3763_v17 = vadd.f32 %v4294_v5, %v4050_v26  ;;  %v4297_v34 = vadd.f32 %v4296_v13, %v4295_v11 }
 0x916   : > { %3782 = vst.msk [vmem:[%s6461_s20 + $0x20] sm:$0xff] %vm3777_vm15, %v3763_v17  ;;  %v3766_v60 = vadd.f32 %v4297_v34, %v4050_v26 }
 0x918   : > { %3783 = vst.msk [vmem:[%s6461_s20 + $0x28] sm:$0xff] %vm3777_vm15, %v3766_v60  ;;  %v4298_v57 = vpop.f32.mrb[8].mxu1 }
 0x919   : > { %v4299_v54 = vpop.f32.mrb[9].mxu1 }
 0x91a   : > { %v4300_v29 = vadd.f32 %v4299_v54, %v4298_v57  ;;  %v4301_v15 = vpop.f32.mrb[10].mxu1 }
 0x91b   : > { %v4302_v19 = vpop.f32.mrb[11].mxu1 }
 0x91c   : > { %v3771_v8 = vadd.f32 %v4300_v29, %v4050_v26  ;;  %v4303_v31 = vadd.f32 %v4302_v19, %v4301_v15 }
 0x91e   : > { %3784 = vst.msk [vmem:[%s6461_s20 + $0x30] sm:$0xff] %vm3777_vm15, %v3771_v8  ;;  %v3774_v6 = vadd.f32 %v4303_v31, %v4050_v26 }
 0x920   : > { %3785 = vst.msk [vmem:[%s6461_s20 + $0x38] sm:$0xff] %vm3777_vm15, %v3774_v6 }
 0x921 PF: > { %s6462_s24 = sld [smem:[#allocation10_spill]]  ;;  %s6463_s19 = sld [smem:[#allocation9_spill]] }
 0x922   : > { %s6464_s23 = sld [smem:[#allocation11_spill]]  ;;  %s6465_s21 = smov %s5075_s22 }
 0x927   : > { %p29_p1 = scmp.ge.s32.totalorder %s6462_s24, 6   ;;  %s6466_s22 = smov %s6463_s19 }
 0x929   :  { %31 = sbr.rel (!%p29_p1) target bundleno = 12 (0xc), region = 157 }
 0x930   :  { %3797 = vsyncpa [#allocation4], 1 }
 0x931   :  { %3799 = vsyncpa [#allocation4 + $0x1], 1 }
 0x932   :  { %3800 = vsyncpa [#allocation6], 1 }
 0x933   :  { %3802 = vsyncpa [#allocation6 + $0x1], 1 }

</bundles_post_ra>
